<compile_context>
chip_gen: v7x
topology: tpu7x:2x2x1
jax: 0.10.0
libtpu: 0.0.40
codegen_flags: <defaults>
</compile_context>

<pallas_src>
import functools

import jax
import jax.numpy as jnp
from jax.experimental import pallas as pl
from jax.experimental.pallas import tpu as pltpu

_EPS = 1e-5


# ---------------------------------------------------------------------------
# small helpers
# ---------------------------------------------------------------------------
def _choose_row_tile(m, target=1024):
    """Row tile: multiple of 8, <= target, >=2 grid steps when possible."""
    if m <= 256:
        return m
    for t in (target, 512, 256):
        if 2 * t <= m:
            return t
    return m


def _scale_bias(sum_c, sqsum_c, count, gamma, beta):
    """Fold training-mode BN (biased variance) into per-channel scale / bias."""
    mean = sum_c / count
    var = jnp.maximum(sqsum_c / count - mean * mean, 0.0)
    scale = gamma / jnp.sqrt(var + _EPS)
    bias = beta - mean * scale
    return scale, bias


# ---------------------------------------------------------------------------
# stage 1: relu(bn1(x)) @ [W1 | Ws]   (+ partial bn2 statistics of y1)
# ---------------------------------------------------------------------------
def _make_stage1_kernel(m_valid, tm, with_shortcut):
    def kernel(*refs):
        if with_shortcut:
            x_ref, s_ref, b_ref, w1_ref, ws_ref, y_ref, sc_ref, st_ref = refs
        else:
            x_ref, s_ref, b_ref, w1_ref, y_ref, st_ref = refs
        i = pl.program_id(0)

        # fused bn1 + relu epilogue (f32 on the VPU)
        a = jnp.maximum(x_ref[...] * s_ref[...] + b_ref[...], 0.0)
        # zero rows past the true row count so bn2 stats stay exact for a
        # ragged final tile
        rows = jax.lax.broadcasted_iota(jnp.int32, a.shape, 0) + i * tm
        a = jnp.where(rows < m_valid, a, 0.0)

        ab = a.astype(jnp.bfloat16)                         # MXU operands in bf16
        y = jnp.dot(ab, w1_ref[...], preferred_element_type=jnp.float32)
        y_ref[...] = y
        if with_shortcut:
            sc_ref[...] = jnp.dot(ab, ws_ref[...],
                                  preferred_element_type=jnp.float32)

        # per-tile partial bn2 statistics of y1 (tiny; summed outside)
        st_ref[0, 0:1, :] = jnp.sum(y, axis=0, keepdims=True)
        st_ref[0, 1:2, :] = jnp.sum(y * y, axis=0, keepdims=True)

    return kernel


def _stage1(x2, scale, bias, w1, ws):
    M, K = x2.shape
    C1 = w1.shape[1]
    tm = _choose_row_tile(M)
    nblk = pl.cdiv(M, tm)
    with_sc = ws is not None

    s2d = scale.reshape(1, K).astype(jnp.float32)
    b2d = bias.reshape(1, K).astype(jnp.float32)

    in_specs = [
        pl.BlockSpec((tm, K), lambda i: (i, 0)),
        pl.BlockSpec((1, K), lambda i: (0, 0)),
        pl.BlockSpec((1, K), lambda i: (0, 0)),
        pl.BlockSpec((K, C1), lambda i: (0, 0)),
    ]
    args = [x2, s2d, b2d, w1.astype(jnp.bfloat16)]
    out_shape = [jax.ShapeDtypeStruct((M, C1), jnp.float32)]
    out_specs = [pl.BlockSpec((tm, C1), lambda i: (i, 0))]
    if with_sc:
        Cs = ws.shape[1]
        in_specs.append(pl.BlockSpec((K, Cs), lambda i: (0, 0)))
        args.append(ws.astype(jnp.bfloat16))
        out_shape.append(jax.ShapeDtypeStruct((M, Cs), jnp.float32))
        out_specs.append(pl.BlockSpec((tm, Cs), lambda i: (i, 0)))
    out_shape.append(jax.ShapeDtypeStruct((nblk, 2, C1), jnp.float32))
    out_specs.append(pl.BlockSpec((1, 2, C1), lambda i: (i, 0, 0)))

    return pl.pallas_call(
        _make_stage1_kernel(M, tm, with_sc),
        out_shape=tuple(out_shape),
        grid=(nblk,),
        in_specs=in_specs,
        out_specs=tuple(out_specs),
        compiler_params=pltpu.CompilerParams(dimension_semantics=("parallel",)),
    )(*args)


# ---------------------------------------------------------------------------
# stage 2: 3x3 / stride conv (pad=1) fused with the bn2+relu epilogue
#          (+ partial bn3 statistics of y2).  No im2col in HBM.
# ---------------------------------------------------------------------------
def _make_conv2_kernel(H, W, Ho, Wo, stride):
    def kernel(y1_ref, s_ref, b_ref, w_ref, o_ref, st_ref, apad_ref):
        # fused bn2 + relu epilogue, then spatial zero-padding into VMEM scratch
        # (padding has to happen AFTER the activation)
        a = jnp.maximum(y1_ref[0] * s_ref[...] + b_ref[...], 0.0)   # (H, W, C)
        apad_ref[...] = jnp.zeros_like(apad_ref)
        apad_ref[1:H + 1, 1:W + 1, :] = a

        w = w_ref[...]                                              # (9, C, Co) bf16
        co = w.shape[-1]

        def row_body(ho, carry):
            s0, s1 = carry
            h0 = ho * stride
            acc = jnp.zeros((Wo, co), jnp.float32)
            for kh in range(3):
                for kw in range(3):
                    if stride == 1:
                        win = apad_ref[h0 + kh, pl.ds(kw, Wo), :]
                    else:
                        win = apad_ref[h0 + kh, pl.ds(kw, Wo, stride), :]
                    acc = acc + jnp.dot(win.astype(jnp.bfloat16),
                                        w[kh * 3 + kw],
                                        preferred_element_type=jnp.float32)
            o_ref[0, ho] = acc
            s0 = s0 + jnp.sum(acc, axis=0, keepdims=True)
            s1 = s1 + jnp.sum(acc * acc, axis=0, keepdims=True)
            return s0, s1

        zero = jnp.zeros((1, co), jnp.float32)
        s0, s1 = jax.lax.fori_loop(0, Ho, row_body, (zero, zero))
        st_ref[0, 0:1, :] = s0
        st_ref[0, 1:2, :] = s1

    return kernel


def _stage2(y1_nhwc, scale, bias, w2t, stride):
    N, H, W, C = y1_nhwc.shape
    Co = w2t.shape[-1]
    Ho = (H - 1) // stride + 1
    Wo = (W - 1) // stride + 1

    s2d = scale.reshape(1, C).astype(jnp.float32)
    b2d = bias.reshape(1, C).astype(jnp.float32)

    return pl.pallas_call(
        _make_conv2_kernel(H, W, Ho, Wo, stride),
        out_shape=(jax.ShapeDtypeStruct((N, Ho, Wo, Co), jnp.float32),
                   jax.ShapeDtypeStruct((N, 2, Co), jnp.float32)),
        grid=(N,),
        in_specs=[
            pl.BlockSpec((1, H, W, C), lambda n: (n, 0, 0, 0)),
            pl.BlockSpec((1, C), lambda n: (0, 0)),
            pl.BlockSpec((1, C), lambda n: (0, 0)),
            pl.BlockSpec((9, C, Co), lambda n: (0, 0, 0)),
        ],
        out_specs=(pl.BlockSpec((1, Ho, Wo, Co), lambda n: (n, 0, 0, 0)),
                   pl.BlockSpec((1, 2, Co), lambda n: (n, 0, 0))),
        scratch_shapes=[pltpu.VMEM((H + 2, W + 2, C), jnp.float32)],
        compiler_params=pltpu.CompilerParams(dimension_semantics=("parallel",)),
    )(y1_nhwc, s2d, b2d, w2t.astype(jnp.bfloat16))


# ---------------------------------------------------------------------------
# stage 3: relu(bn3(y2)) @ W3 + shortcut   (residual fused into the epilogue)
# ---------------------------------------------------------------------------
def _stage3_kernel(x_ref, s_ref, b_ref, w_ref, r_ref, o_ref):
    a = jnp.maximum(x_ref[...] * s_ref[...] + b_ref[...], 0.0)
    o_ref[...] = (jnp.dot(a.astype(jnp.bfloat16), w_ref[...],
                          preferred_element_type=jnp.float32) + r_ref[...])


def _stage3(y2_2d, scale, bias, w3, resid):
    M, K = y2_2d.shape
    C = w3.shape[1]
    tm = _choose_row_tile(M)
    nblk = pl.cdiv(M, tm)
    s2d = scale.reshape(1, K).astype(jnp.float32)
    b2d = bias.reshape(1, K).astype(jnp.float32)
    return pl.pallas_call(
        _stage3_kernel,
        out_shape=jax.ShapeDtypeStruct((M, C), jnp.float32),
        grid=(nblk,),
        in_specs=[
            pl.BlockSpec((tm, K), lambda i: (i, 0)),
            pl.BlockSpec((1, K), lambda i: (0, 0)),
            pl.BlockSpec((1, K), lambda i: (0, 0)),
            pl.BlockSpec((K, C), lambda i: (0, 0)),
            pl.BlockSpec((tm, C), lambda i: (i, 0)),
        ],
        out_specs=pl.BlockSpec((tm, C), lambda i: (i, 0)),
        compiler_params=pltpu.CompilerParams(dimension_semantics=("parallel",)),
    )(y2_2d, s2d, b2d, w3.astype(jnp.bfloat16), resid)


# ---------------------------------------------------------------------------
# PreActBottleneck forward (NCHW in / NCHW out, like the PyTorch module)
# ---------------------------------------------------------------------------
def preact_bottleneck_forward(x_nchw, p, stride, has_shortcut):
    # TODO(synk): keep the surrounding model in NHWC to drop these two transposes.
    x = jnp.transpose(x_nchw, (0, 2, 3, 1)).astype(jnp.float32)      # NCHW -> NHWC
    N, H, W, Cin = x.shape
    planes = p["w1"].shape[1]
    C4 = p["w3"].shape[1]

    # bn1 batch statistics (plain-JAX reduction over the input)
    mean1 = jnp.mean(x, axis=(0, 1, 2))
    var1 = jnp.mean((x - mean1) ** 2, axis=(0, 1, 2))
    s1 = p["g1"] / jnp.sqrt(var1 + _EPS)
    b1 = p["be1"] - mean1 * s1

    M = N * H * W
    x2 = x.reshape(M, Cin)

    # stage 1: fused relu(bn1(x)) @ [W1 | Ws]   (+ partial bn2 stats)
    if has_shortcut:
        y1, sc_full, st1 = _stage1(x2, s1, b1, p["w1"], p["ws"])
    else:
        y1, st1 = _stage1(x2, s1, b1, p["w1"], None)
        sc_full = None
    st1 = jnp.sum(st1, axis=0)
    s2, b2 = _scale_bias(st1[0], st1[1], M, p["g2"], p["be2"])

    # stage 2: fused bn2+relu + 3x3/stride conv   (+ partial bn3 stats)
    y2, st2 = _stage2(y1.reshape(N, H, W, planes), s2, b2, p["w2t"], stride)
    _, Ho, Wo, _ = y2.shape
    M2 = N * Ho * Wo
    st2 = jnp.sum(st2, axis=0)
    s3, b3 = _scale_bias(st2[0], st2[1], M2, p["g3"], p["be3"])

    # residual
    if has_shortcut:
        if stride > 1:
            sc = sc_full.reshape(N, H, W, C4)[:, ::stride, ::stride, :]
            sc = sc.reshape(M2, C4)
        else:
            sc = sc_full
    else:
        sc = x2                              # identity (stride==1, Cin == 4*planes)

    # stage 3: fused relu(bn3(y2)) @ W3 + shortcut
    out = _stage3(y2.reshape(M2, planes), s3, b3, p["w3"], sc)

    out = out.reshape(N, Ho, Wo, C4)
    return jnp.transpose(out, (0, 3, 1, 2))                          # NHWC -> NCHW


# ---------------------------------------------------------------------------
# Pure-JAX reference (lax.conv) for verification
# ---------------------------------------------------------------------------
def reference_forward(x_nchw, p, stride, has_shortcut):
    def bn(x, g, b):
        mean = jnp.mean(x, axis=(0, 2, 3), keepdims=True)
        var = jnp.mean((x - mean) ** 2, axis=(0, 2, 3), keepdims=True)
        return ((x - mean) / jnp.sqrt(var + _EPS)
                * g.reshape(1, -1, 1, 1) + b.reshape(1, -1, 1, 1))

    def conv(x, w, s=1, pad=0):
        return jax.lax.conv_general_dilated(
            x, w, (s, s), [(pad, pad), (pad, pad)],
            dimension_numbers=("NCHW", "OIHW", "NCHW"))

    out = jax.nn.relu(bn(x_nchw, p["g1"], p["be1"]))
    shortcut = conv(out, p["ws_oihw"], stride) if has_shortcut else x_nchw
    out = conv(out, p["w1_oihw"])
    out = conv(jax.nn.relu(bn(out, p["g2"], p["be2"])), p["w2_oihw"], stride, 1)
    out = conv(jax.nn.relu(bn(out, p["g3"], p["be3"])), p["w3_oihw"])
    return out + shortcut


# ---------------------------------------------------------------------------
# Main
# ---------------------------------------------------------------------------
def _make_params(key, in_planes, planes, expansion):
    ks = jax.random.split(key, 10)
    w1 = 0.1 * jax.random.normal(ks[0], (planes, in_planes, 1, 1), jnp.float32)
    w2 = 0.1 * jax.random.normal(ks[1], (planes, planes, 3, 3), jnp.float32)
    w3 = 0.1 * jax.random.normal(ks[2], (expansion * planes, planes, 1, 1), jnp.float32)
    ws = 0.1 * jax.random.normal(ks[3], (expansion * planes, in_planes, 1, 1), jnp.float32)
    return {
        "g1": 1.0 + 0.1 * jax.random.normal(ks[4], (in_planes,), jnp.float32),
        "be1": 0.1 * jax.random.normal(ks[5], (in_planes,), jnp.float32),
        "g2": 1.0 + 0.1 * jax.random.normal(ks[6], (planes,), jnp.float32),
        "be2": 0.1 * jax.random.normal(ks[7], (planes,), jnp.float32),
        "g3": 1.0 + 0.1 * jax.random.normal(ks[8], (planes,), jnp.float32),
        "be3": 0.1 * jax.random.normal(ks[9], (planes,), jnp.float32),
        # matmul-layout weights used by the Pallas kernels
        "w1": jnp.transpose(w1[:, :, 0, 0], (1, 0)),                        # (Cin, planes)
        "w2t": jnp.transpose(w2, (2, 3, 1, 0)).reshape(9, planes, planes),  # (9, Cin2, planes)
        "w3": jnp.transpose(w3[:, :, 0, 0], (1, 0)),                        # (planes, 4*planes)
        "ws": jnp.transpose(ws[:, :, 0, 0], (1, 0)),                        # (Cin, 4*planes)
        # original OIHW weights (for the lax.conv reference)
        "w1_oihw": w1, "w2_oihw": w2, "w3_oihw": w3, "ws_oihw": ws,
    }


def _run_case(key, N, in_planes, planes, stride, H=16, W=16, expansion=4):
    has_shortcut = (stride != 1) or (in_planes != expansion * planes)
    kp, kx = jax.random.split(key)
    p = _make_params(kp, in_planes, planes, expansion)
    x = jax.random.normal(kx, (N, in_planes, H, W), jnp.float32)

    fwd = jax.jit(functools.partial(preact_bottleneck_forward,
                                    stride=stride, has_shortcut=has_shortcut))
    out = jax.block_until_ready(fwd(x, p))
    ref = jax.block_until_ready(reference_forward(x, p, stride, has_shortcut))

    Ho = (H - 1) // stride + 1
    Wo = (W - 1) // stride + 1
    assert out.shape == ref.shape == (N, expansion * planes, Ho, Wo)
    err = float(jnp.max(jnp.abs(out - ref)))
    assert err < 2.5e-2, f"mismatch vs reference: max abs err {err}"


if __name__ == "__main__":
    root = jax.random.PRNGKey(0)
    k1, k2 = jax.random.split(root)
    # strided block with projection shortcut (the downsampling bottleneck)
    _run_case(k1, N=2, in_planes=16, planes=8, stride=2)
    # stride-1 block with identity shortcut (in_planes == expansion*planes)
    _run_case(k2, N=2, in_planes=32, planes=8, stride=1)
    print("KERNEL_OK")
</pallas_src>

<mosaic_0001>
module attributes {stable_mosaic.version = 11 : i64} {
  func.func @kernel(%arg0: i32, %arg1: memref<1x16x16x8xf32, #tpu.memory_space<vmem>>, %arg2: memref<1x8xf32, #tpu.memory_space<vmem>>, %arg3: memref<1x8xf32, #tpu.memory_space<vmem>>, %arg4: memref<9x8x8xbf16, #tpu.memory_space<vmem>>, %arg5: memref<1x8x8x8xf32, #tpu.memory_space<vmem>>, %arg6: memref<1x2x8xf32, #tpu.memory_space<vmem>>, %arg7: memref<18x18x8xf32, #tpu.memory_space<vmem>>) attributes {dimension_semantics = [#tpu.dimension_semantics<parallel>], iteration_bounds = array<i64: 2>, scalar_prefetch = 0 : i64, scratch_operands = 1 : i64, tpu.core_type = #tpu.core_type<tc>, window_params = [{transform_indices = @transform_0, window_bounds = array<i64: 1, 16, 16, 8>}, {pipeline_mode = #tpu.pipeline_mode<synchronous>, transform_indices = @transform_1, window_bounds = array<i64: 1, 8>}, {pipeline_mode = #tpu.pipeline_mode<synchronous>, transform_indices = @transform_2, window_bounds = array<i64: 1, 8>}, {pipeline_mode = #tpu.pipeline_mode<synchronous>, transform_indices = @transform_3, window_bounds = array<i64: 9, 8, 8>}, {transform_indices = @transform_4, window_bounds = array<i64: 1, 8, 8, 8>}, {transform_indices = @transform_5, window_bounds = array<i64: 1, 2, 8>}]} {
    %c0 = arith.constant 0 : index
    %c0_0 = arith.constant 0 : index
    %c0_1 = arith.constant 0 : index
    %c0_2 = arith.constant 0 : index
    %0 = vector.load %arg1[%c0, %c0_0, %c0_1, %c0_2] : memref<1x16x16x8xf32, #tpu.memory_space<vmem>>, vector<1x16x16x8xf32>
    %1 = vector.shape_cast %0 : vector<1x16x16x8xf32> to vector<16x16x8xf32>
    %c0_3 = arith.constant 0 : index
    %c0_4 = arith.constant 0 : index
    %2 = vector.load %arg2[%c0_3, %c0_4] : memref<1x8xf32, #tpu.memory_space<vmem>>, vector<1x8xf32>
    %3 = vector.shape_cast %2 : vector<1x8xf32> to vector<1x1x8xf32>
    %4 = vector.broadcast %3 : vector<1x1x8xf32> to vector<16x16x8xf32>
    %5 = arith.mulf %1, %4 : vector<16x16x8xf32>
    %c0_5 = arith.constant 0 : index
    %c0_6 = arith.constant 0 : index
    %6 = vector.load %arg3[%c0_5, %c0_6] : memref<1x8xf32, #tpu.memory_space<vmem>>, vector<1x8xf32>
    %7 = vector.shape_cast %6 : vector<1x8xf32> to vector<1x1x8xf32>
    %8 = vector.broadcast %7 : vector<1x1x8xf32> to vector<16x16x8xf32>
    %9 = arith.addf %5, %8 : vector<16x16x8xf32>
    %cst = arith.constant 0.000000e+00 : f32
    %10 = vector.broadcast %cst : f32 to vector<16x16x8xf32>
    %11 = arith.maximumf %9, %10 : vector<16x16x8xf32>
    %cst_7 = arith.constant 0.000000e+00 : f32
    %12 = vector.broadcast %cst_7 : f32 to vector<18x18x8xf32>
    %c0_8 = arith.constant 0 : index
    %c0_9 = arith.constant 0 : index
    %c0_10 = arith.constant 0 : index
    %13 = vector.load %arg7[%c0_8, %c0_9, %c0_10] : memref<18x18x8xf32, #tpu.memory_space<vmem>>, vector<18x18x8xf32>
    tpu.vector_store %arg7[%c0_8, %c0_9, %c0_10], %12 {strides = array<i32>} : memref<18x18x8xf32, #tpu.memory_space<vmem>>, vector<18x18x8xf32>,
    %c1 = arith.constant 1 : index
    %c1_11 = arith.constant 1 : index
    %c0_12 = arith.constant 0 : index
    %14 = vector.load %arg7[%c1, %c1_11, %c0_12] : memref<18x18x8xf32, #tpu.memory_space<vmem>>, vector<16x16x8xf32>
    tpu.vector_store %arg7[%c1, %c1_11, %c0_12], %11 {strides = array<i32>} : memref<18x18x8xf32, #tpu.memory_space<vmem>>, vector<16x16x8xf32>,
    %c0_13 = arith.constant 0 : index
    %c0_14 = arith.constant 0 : index
    %c0_15 = arith.constant 0 : index
    %15 = vector.load %arg4[%c0_13, %c0_14, %c0_15] : memref<9x8x8xbf16, #tpu.memory_space<vmem>>, vector<9x8x8xbf16>
    %cst_16 = arith.constant 0.000000e+00 : f32
    %16 = vector.broadcast %cst_16 : f32 to vector<1x8xf32>
    %c0_i32 = arith.constant 0 : i32
    %c8_i32 = arith.constant 8 : i32
    %17 = arith.addi %c0_i32, %c8_i32 : i32
    %c1_i32 = arith.constant 1 : i32
    %18:2 = scf.for %arg8 = %c0_i32 to %17 step %c1_i32 iter_args(%arg9 = %16, %arg10 = %16) -> (vector<1x8xf32>, vector<1x8xf32>)  : i32 {
      %c2_i32 = arith.constant 2 : i32
      %25 = arith.muli %arg8, %c2_i32 : i32
      %cst_24 = arith.constant 0.000000e+00 : f32
      %26 = vector.broadcast %cst_24 : f32 to vector<8x8xf32>
      %c0_i32_25 = arith.constant 0 : i32
      %27 = arith.addi %25, %c0_i32_25 : i32
      %28 = arith.index_cast %27 : i32 to index
      %c0_26 = arith.constant 0 : index
      %c0_27 = arith.constant 0 : index
      %29 = tpu.strided_load %arg7[%28, %c0_26, %c0_27] {strides = array<i32: 1, 2, 1>} : memref<18x18x8xf32, #tpu.memory_space<vmem>>, vector<1x8x8xf32>
      %30 = vector.shape_cast %29 : vector<1x8x8xf32> to vector<8x8xf32>
      %31 = arith.truncf %30 : vector<8x8xf32> to vector<8x8xbf16>
      %32 = vector.extract_strided_slice %15 {offsets = [0, 0, 0], sizes = [1, 8, 8], strides = [1, 1, 1]} : vector<9x8x8xbf16> to vector<1x8x8xbf16>
      %33 = vector.shape_cast %32 : vector<1x8x8xbf16> to vector<8x8xbf16>
      %cst_28 = arith.constant dense<0.000000e+00> : vector<8x8xf32>
      %34 = tpu.matmul %31, %33, %cst_28 {dimension_numbers = #tpu.dot_dimension_numbers<[1], [0], [0], [1], [0, 0, 1, 1], [], []>} : vector<8x8xbf16>, vector<8x8xbf16>, vector<8x8xf32> -> vector<8x8xf32>
      %35 = arith.addf %26, %34 : vector<8x8xf32>
      %c0_i32_29 = arith.constant 0 : i32
      %36 = arith.addi %25, %c0_i32_29 : i32
      %37 = arith.index_cast %36 : i32 to index
      %c1_30 = arith.constant 1 : index
      %c0_31 = arith.constant 0 : index
      %38 = tpu.strided_load %arg7[%37, %c1_30, %c0_31] {strides = array<i32: 1, 2, 1>} : memref<18x18x8xf32, #tpu.memory_space<vmem>>, vector<1x8x8xf32>
      %39 = vector.shape_cast %38 : vector<1x8x8xf32> to vector<8x8xf32>
      %40 = arith.truncf %39 : vector<8x8xf32> to vector<8x8xbf16>
      %41 = vector.extract_strided_slice %15 {offsets = [1, 0, 0], sizes = [1, 8, 8], strides = [1, 1, 1]} : vector<9x8x8xbf16> to vector<1x8x8xbf16>
      %42 = vector.shape_cast %41 : vector<1x8x8xbf16> to vector<8x8xbf16>
      %cst_32 = arith.constant dense<0.000000e+00> : vector<8x8xf32>
      %43 = tpu.matmul %40, %42, %cst_32 {dimension_numbers = #tpu.dot_dimension_numbers<[1], [0], [0], [1], [0, 0, 1, 1], [], []>} : vector<8x8xbf16>, vector<8x8xbf16>, vector<8x8xf32> -> vector<8x8xf32>
      %44 = arith.addf %35, %43 : vector<8x8xf32>
      %c0_i32_33 = arith.constant 0 : i32
      %45 = arith.addi %25, %c0_i32_33 : i32
      %46 = arith.index_cast %45 : i32 to index
      %c2 = arith.constant 2 : index
      %c0_34 = arith.constant 0 : index
      %47 = tpu.strided_load %arg7[%46, %c2, %c0_34] {strides = array<i32: 1, 2, 1>} : memref<18x18x8xf32, #tpu.memory_space<vmem>>, vector<1x8x8xf32>
      %48 = vector.shape_cast %47 : vector<1x8x8xf32> to vector<8x8xf32>
      %49 = arith.truncf %48 : vector<8x8xf32> to vector<8x8xbf16>
      %50 = vector.extract_strided_slice %15 {offsets = [2, 0, 0], sizes = [1, 8, 8], strides = [1, 1, 1]} : vector<9x8x8xbf16> to vector<1x8x8xbf16>
      %51 = vector.shape_cast %50 : vector<1x8x8xbf16> to vector<8x8xbf16>
      %cst_35 = arith.constant dense<0.000000e+00> : vector<8x8xf32>
      %52 = tpu.matmul %49, %51, %cst_35 {dimension_numbers = #tpu.dot_dimension_numbers<[1], [0], [0], [1], [0, 0, 1, 1], [], []>} : vector<8x8xbf16>, vector<8x8xbf16>, vector<8x8xf32> -> vector<8x8xf32>
      %53 = arith.addf %44, %52 : vector<8x8xf32>
      %c1_i32_36 = arith.constant 1 : i32
      %54 = arith.addi %25, %c1_i32_36 : i32
      %55 = arith.index_cast %54 : i32 to index
      %c0_37 = arith.constant 0 : index
      %c0_38 = arith.constant 0 : index
      %56 = tpu.strided_load %arg7[%55, %c0_37, %c0_38] {strides = array<i32: 1, 2, 1>} : memref<18x18x8xf32, #tpu.memory_space<vmem>>, vector<1x8x8xf32>
      %57 = vector.shape_cast %56 : vector<1x8x8xf32> to vector<8x8xf32>
      %58 = arith.truncf %57 : vector<8x8xf32> to vector<8x8xbf16>
      %59 = vector.extract_strided_slice %15 {offsets = [3, 0, 0], sizes = [1, 8, 8], strides = [1, 1, 1]} : vector<9x8x8xbf16> to vector<1x8x8xbf16>
      %60 = vector.shape_cast %59 : vector<1x8x8xbf16> to vector<8x8xbf16>
      %cst_39 = arith.constant dense<0.000000e+00> : vector<8x8xf32>
      %61 = tpu.matmul %58, %60, %cst_39 {dimension_numbers = #tpu.dot_dimension_numbers<[1], [0], [0], [1], [0, 0, 1, 1], [], []>} : vector<8x8xbf16>, vector<8x8xbf16>, vector<8x8xf32> -> vector<8x8xf32>
      %62 = arith.addf %53, %61 : vector<8x8xf32>
      %c1_i32_40 = arith.constant 1 : i32
      %63 = arith.addi %25, %c1_i32_40 : i32
      %64 = arith.index_cast %63 : i32 to index
      %c1_41 = arith.constant 1 : index
      %c0_42 = arith.constant 0 : index
      %65 = tpu.strided_load %arg7[%64, %c1_41, %c0_42] {strides = array<i32: 1, 2, 1>} : memref<18x18x8xf32, #tpu.memory_space<vmem>>, vector<1x8x8xf32>
      %66 = vector.shape_cast %65 : vector<1x8x8xf32> to vector<8x8xf32>
      %67 = arith.truncf %66 : vector<8x8xf32> to vector<8x8xbf16>
      %68 = vector.extract_strided_slice %15 {offsets = [4, 0, 0], sizes = [1, 8, 8], strides = [1, 1, 1]} : vector<9x8x8xbf16> to vector<1x8x8xbf16>
      %69 = vector.shape_cast %68 : vector<1x8x8xbf16> to vector<8x8xbf16>
      %cst_43 = arith.constant dense<0.000000e+00> : vector<8x8xf32>
      %70 = tpu.matmul %67, %69, %cst_43 {dimension_numbers = #tpu.dot_dimension_numbers<[1], [0], [0], [1], [0, 0, 1, 1], [], []>} : vector<8x8xbf16>, vector<8x8xbf16>, vector<8x8xf32> -> vector<8x8xf32>
      %71 = arith.addf %62, %70 : vector<8x8xf32>
      %c1_i32_44 = arith.constant 1 : i32
      %72 = arith.addi %25, %c1_i32_44 : i32
      %73 = arith.index_cast %72 : i32 to index
      %c2_45 = arith.constant 2 : index
      %c0_46 = arith.constant 0 : index
      %74 = tpu.strided_load %arg7[%73, %c2_45, %c0_46] {strides = array<i32: 1, 2, 1>} : memref<18x18x8xf32, #tpu.memory_space<vmem>>, vector<1x8x8xf32>
      %75 = vector.shape_cast %74 : vector<1x8x8xf32> to vector<8x8xf32>
      %76 = arith.truncf %75 : vector<8x8xf32> to vector<8x8xbf16>
      %77 = vector.extract_strided_slice %15 {offsets = [5, 0, 0], sizes = [1, 8, 8], strides = [1, 1, 1]} : vector<9x8x8xbf16> to vector<1x8x8xbf16>
      %78 = vector.shape_cast %77 : vector<1x8x8xbf16> to vector<8x8xbf16>
      %cst_47 = arith.constant dense<0.000000e+00> : vector<8x8xf32>
      %79 = tpu.matmul %76, %78, %cst_47 {dimension_numbers = #tpu.dot_dimension_numbers<[1], [0], [0], [1], [0, 0, 1, 1], [], []>} : vector<8x8xbf16>, vector<8x8xbf16>, vector<8x8xf32> -> vector<8x8xf32>
      %80 = arith.addf %71, %79 : vector<8x8xf32>
      %c2_i32_48 = arith.constant 2 : i32
      %81 = arith.addi %25, %c2_i32_48 : i32
      %82 = arith.index_cast %81 : i32 to index
      %c0_49 = arith.constant 0 : index
      %c0_50 = arith.constant 0 : index
      %83 = tpu.strided_load %arg7[%82, %c0_49, %c0_50] {strides = array<i32: 1, 2, 1>} : memref<18x18x8xf32, #tpu.memory_space<vmem>>, vector<1x8x8xf32>
      %84 = vector.shape_cast %83 : vector<1x8x8xf32> to vector<8x8xf32>
      %85 = arith.truncf %84 : vector<8x8xf32> to vector<8x8xbf16>
      %86 = vector.extract_strided_slice %15 {offsets = [6, 0, 0], sizes = [1, 8, 8], strides = [1, 1, 1]} : vector<9x8x8xbf16> to vector<1x8x8xbf16>
      %87 = vector.shape_cast %86 : vector<1x8x8xbf16> to vector<8x8xbf16>
      %cst_51 = arith.constant dense<0.000000e+00> : vector<8x8xf32>
      %88 = tpu.matmul %85, %87, %cst_51 {dimension_numbers = #tpu.dot_dimension_numbers<[1], [0], [0], [1], [0, 0, 1, 1], [], []>} : vector<8x8xbf16>, vector<8x8xbf16>, vector<8x8xf32> -> vector<8x8xf32>
      %89 = arith.addf %80, %88 : vector<8x8xf32>
      %c2_i32_52 = arith.constant 2 : i32
      %90 = arith.addi %25, %c2_i32_52 : i32
      %91 = arith.index_cast %90 : i32 to index
      %c1_53 = arith.constant 1 : index
      %c0_54 = arith.constant 0 : index
      %92 = tpu.strided_load %arg7[%91, %c1_53, %c0_54] {strides = array<i32: 1, 2, 1>} : memref<18x18x8xf32, #tpu.memory_space<vmem>>, vector<1x8x8xf32>
      %93 = vector.shape_cast %92 : vector<1x8x8xf32> to vector<8x8xf32>
      %94 = arith.truncf %93 : vector<8x8xf32> to vector<8x8xbf16>
      %95 = vector.extract_strided_slice %15 {offsets = [7, 0, 0], sizes = [1, 8, 8], strides = [1, 1, 1]} : vector<9x8x8xbf16> to vector<1x8x8xbf16>
      %96 = vector.shape_cast %95 : vector<1x8x8xbf16> to vector<8x8xbf16>
      %cst_55 = arith.constant dense<0.000000e+00> : vector<8x8xf32>
      %97 = tpu.matmul %94, %96, %cst_55 {dimension_numbers = #tpu.dot_dimension_numbers<[1], [0], [0], [1], [0, 0, 1, 1], [], []>} : vector<8x8xbf16>, vector<8x8xbf16>, vector<8x8xf32> -> vector<8x8xf32>
      %98 = arith.addf %89, %97 : vector<8x8xf32>
      %c2_i32_56 = arith.constant 2 : i32
      %99 = arith.addi %25, %c2_i32_56 : i32
      %100 = arith.index_cast %99 : i32 to index
      %c2_57 = arith.constant 2 : index
      %c0_58 = arith.constant 0 : index
      %101 = tpu.strided_load %arg7[%100, %c2_57, %c0_58] {strides = array<i32: 1, 2, 1>} : memref<18x18x8xf32, #tpu.memory_space<vmem>>, vector<1x8x8xf32>
      %102 = vector.shape_cast %101 : vector<1x8x8xf32> to vector<8x8xf32>
      %103 = arith.truncf %102 : vector<8x8xf32> to vector<8x8xbf16>
      %104 = vector.extract_strided_slice %15 {offsets = [8, 0, 0], sizes = [1, 8, 8], strides = [1, 1, 1]} : vector<9x8x8xbf16> to vector<1x8x8xbf16>
      %105 = vector.shape_cast %104 : vector<1x8x8xbf16> to vector<8x8xbf16>
      %cst_59 = arith.constant dense<0.000000e+00> : vector<8x8xf32>
      %106 = tpu.matmul %103, %105, %cst_59 {dimension_numbers = #tpu.dot_dimension_numbers<[1], [0], [0], [1], [0, 0, 1, 1], [], []>} : vector<8x8xbf16>, vector<8x8xbf16>, vector<8x8xf32> -> vector<8x8xf32>
      %107 = arith.addf %98, %106 : vector<8x8xf32>
      %c0_60 = arith.constant 0 : index
      %108 = arith.index_cast %arg8 : i32 to index
      %c0_61 = arith.constant 0 : index
      %c0_62 = arith.constant 0 : index
      %109 = vector.load %arg5[%c0_60, %108, %c0_61, %c0_62] : memref<1x8x8x8xf32, #tpu.memory_space<vmem>>, vector<1x1x8x8xf32>
      %110 = vector.shape_cast %109 : vector<1x1x8x8xf32> to vector<8x8xf32>
      %111 = vector.shape_cast %107 : vector<8x8xf32> to vector<1x1x8x8xf32>
      tpu.vector_store %arg5[%c0_60, %108, %c0_61, %c0_62], %111 {strides = array<i32>} : memref<1x8x8x8xf32, #tpu.memory_space<vmem>>, vector<1x1x8x8xf32>,
      %cst_63 = arith.constant dense<0.000000e+00> : vector<8xf32>
      %112 = vector.multi_reduction <add>, %107, %cst_63 [0] : vector<8x8xf32> to vector<8xf32>
      %113 = vector.shape_cast %112 : vector<8xf32> to vector<1x8xf32>
      %114 = arith.addf %arg9, %113 : vector<1x8xf32>
      %115 = arith.mulf %107, %107 : vector<8x8xf32>
      %cst_64 = arith.constant dense<0.000000e+00> : vector<8xf32>
      %116 = vector.multi_reduction <add>, %115, %cst_64 [0] : vector<8x8xf32> to vector<8xf32>
      %117 = vector.shape_cast %116 : vector<8xf32> to vector<1x8xf32>
      %118 = arith.addf %arg10, %117 : vector<1x8xf32>
      scf.yield %114, %118 : vector<1x8xf32>, vector<1x8xf32>
    }
    %c8_i32_17 = arith.constant 8 : i32
    %c0_18 = arith.constant 0 : index
    %c0_19 = arith.constant 0 : index
    %c0_20 = arith.constant 0 : index
    %19 = vector.load %arg6[%c0_18, %c0_19, %c0_20] : memref<1x2x8xf32, #tpu.memory_space<vmem>>, vector<1x1x8xf32>
    %20 = vector.shape_cast %19 : vector<1x1x8xf32> to vector<1x8xf32>
    %21 = vector.shape_cast %18#0 : vector<1x8xf32> to vector<1x1x8xf32>
    tpu.vector_store %arg6[%c0_18, %c0_19, %c0_20], %21 {strides = array<i32>} : memref<1x2x8xf32, #tpu.memory_space<vmem>>, vector<1x1x8xf32>,
    %c0_21 = arith.constant 0 : index
    %c1_22 = arith.constant 1 : index
    %c0_23 = arith.constant 0 : index
    %22 = vector.load %arg6[%c0_21, %c1_22, %c0_23] : memref<1x2x8xf32, #tpu.memory_space<vmem>>, vector<1x1x8xf32>
    %23 = vector.shape_cast %22 : vector<1x1x8xf32> to vector<1x8xf32>
    %24 = vector.shape_cast %18#1 : vector<1x8xf32> to vector<1x1x8xf32>
    tpu.vector_store %arg6[%c0_21, %c1_22, %c0_23], %24 {strides = array<i32>} : memref<1x2x8xf32, #tpu.memory_space<vmem>>, vector<1x1x8xf32>,
    return
  }
  func.func @transform_0(%arg0: i32) -> (i32, i32, i32, i32) {
    %c0_i32 = arith.constant 0 : i32
    %c0_i32_0 = arith.constant 0 : i32
    %c0_i32_1 = arith.constant 0 : i32
    %c0_i32_2 = arith.constant 0 : i32
    return %arg0, %c0_i32, %c0_i32_0, %c0_i32_1 : i32, i32, i32, i32
  }
  func.func @transform_1(%arg0: i32) -> (i32, i32) {
    %c0_i32 = arith.constant 0 : i32
    %c0_i32_0 = arith.constant 0 : i32
    %c0_i32_1 = arith.constant 0 : i32
    return %c0_i32, %c0_i32_0 : i32, i32
  }
  func.func @transform_2(%arg0: i32) -> (i32, i32) {
    %c0_i32 = arith.constant 0 : i32
    %c0_i32_0 = arith.constant 0 : i32
    %c0_i32_1 = arith.constant 0 : i32
    return %c0_i32, %c0_i32_0 : i32, i32
  }
  func.func @transform_3(%arg0: i32) -> (i32, i32, i32) {
    %c0_i32 = arith.constant 0 : i32
    %c0_i32_0 = arith.constant 0 : i32
    %c0_i32_1 = arith.constant 0 : i32
    %c0_i32_2 = arith.constant 0 : i32
    return %c0_i32, %c0_i32_0, %c0_i32_1 : i32, i32, i32
  }
  func.func @transform_4(%arg0: i32) -> (i32, i32, i32, i32) {
    %c0_i32 = arith.constant 0 : i32
    %c0_i32_0 = arith.constant 0 : i32
    %c0_i32_1 = arith.constant 0 : i32
    %c0_i32_2 = arith.constant 0 : i32
    return %arg0, %c0_i32, %c0_i32_0, %c0_i32_1 : i32, i32, i32, i32
  }
  func.func @transform_5(%arg0: i32) -> (i32, i32, i32) {
    %c0_i32 = arith.constant 0 : i32
    %c0_i32_0 = arith.constant 0 : i32
    %c0_i32_1 = arith.constant 0 : i32
    return %arg0, %c0_i32, %c0_i32_0 : i32, i32, i32
  }
}

module attributes {stable_mosaic.version = 11 : i64} {
  func.func @kernel(%arg0: i32, %arg1: memref<256x16xf32, #tpu.memory_space<vmem>>, %arg2: memref<1x16xf32, #tpu.memory_space<vmem>>, %arg3: memref<1x16xf32, #tpu.memory_space<vmem>>, %arg4: memref<16x8xbf16, #tpu.memory_space<vmem>>, %arg5: memref<16x32xbf16, #tpu.memory_space<vmem>>, %arg6: memref<256x8xf32, #tpu.memory_space<vmem>>, %arg7: memref<256x32xf32, #tpu.memory_space<vmem>>, %arg8: memref<1x2x8xf32, #tpu.memory_space<vmem>>) attributes {dimension_semantics = [#tpu.dimension_semantics<parallel>], iteration_bounds = array<i64: 2>, scalar_prefetch = 0 : i64, scratch_operands = 0 : i64, tpu.core_type = #tpu.core_type<tc>, window_params = [{transform_indices = @transform_0, window_bounds = array<i64: 256, 16>}, {pipeline_mode = #tpu.pipeline_mode<synchronous>, transform_indices = @transform_1, window_bounds = array<i64: 1, 16>}, {pipeline_mode = #tpu.pipeline_mode<synchronous>, transform_indices = @transform_2, window_bounds = array<i64: 1, 16>}, {pipeline_mode = #tpu.pipeline_mode<synchronous>, transform_indices = @transform_3, window_bounds = array<i64: 16, 8>}, {pipeline_mode = #tpu.pipeline_mode<synchronous>, transform_indices = @transform_4, window_bounds = array<i64: 16, 32>}, {transform_indices = @transform_5, window_bounds = array<i64: 256, 8>}, {transform_indices = @transform_6, window_bounds = array<i64: 256, 32>}, {transform_indices = @transform_7, window_bounds = array<i64: 1, 2, 8>}]} {
    %c0 = arith.constant 0 : index
    %c0_0 = arith.constant 0 : index
    %0 = vector.load %arg1[%c0, %c0_0] : memref<256x16xf32, #tpu.memory_space<vmem>>, vector<256x16xf32>
    %c0_1 = arith.constant 0 : index
    %c0_2 = arith.constant 0 : index
    %1 = vector.load %arg2[%c0_1, %c0_2] : memref<1x16xf32, #tpu.memory_space<vmem>>, vector<1x16xf32>
    %2 = vector.broadcast %1 : vector<1x16xf32> to vector<256x16xf32>
    %3 = arith.mulf %0, %2 : vector<256x16xf32>
    %c0_3 = arith.constant 0 : index
    %c0_4 = arith.constant 0 : index
    %4 = vector.load %arg3[%c0_3, %c0_4] : memref<1x16xf32, #tpu.memory_space<vmem>>, vector<1x16xf32>
    %5 = vector.broadcast %4 : vector<1x16xf32> to vector<256x16xf32>
    %6 = arith.addf %3, %5 : vector<256x16xf32>
    %cst = arith.constant 0.000000e+00 : f32
    %7 = vector.broadcast %cst : f32 to vector<256x16xf32>
    %8 = arith.maximumf %6, %7 : vector<256x16xf32>
    %9 = tpu.iota {dimensions = array<i32: 0>} : vector<256x16xi32>
    %c256_i32 = arith.constant 256 : i32
    %10 = arith.muli %arg0, %c256_i32 : i32
    %11 = vector.broadcast %10 : i32 to vector<256x16xi32>
    %12 = arith.addi %9, %11 : vector<256x16xi32>
    %c512_i32 = arith.constant 512 : i32
    %13 = vector.broadcast %c512_i32 : i32 to vector<256x16xi32>
    %14 = arith.cmpi slt, %12, %13 : vector<256x16xi32>
    %cst_5 = arith.constant 0.000000e+00 : f32
    %15 = vector.broadcast %cst_5 : f32 to vector<256x16xf32>
    %16 = arith.select %14, %8, %15 : vector<256x16xi1>, vector<256x16xf32>
    %17 = arith.truncf %16 : vector<256x16xf32> to vector<256x16xbf16>
    %c0_6 = arith.constant 0 : index
    %c0_7 = arith.constant 0 : index
    %18 = vector.load %arg4[%c0_6, %c0_7] : memref<16x8xbf16, #tpu.memory_space<vmem>>, vector<16x8xbf16>
    %cst_8 = arith.constant dense<0.000000e+00> : vector<256x8xf32>
    %19 = tpu.matmul %17, %18, %cst_8 {dimension_numbers = #tpu.dot_dimension_numbers<[1], [0], [0], [1], [0, 0, 1, 1], [], []>} : vector<256x16xbf16>, vector<16x8xbf16>, vector<256x8xf32> -> vector<256x8xf32>
    %c0_9 = arith.constant 0 : index
    %c0_10 = arith.constant 0 : index
    %20 = vector.load %arg6[%c0_9, %c0_10] : memref<256x8xf32, #tpu.memory_space<vmem>>, vector<256x8xf32>
    tpu.vector_store %arg6[%c0_9, %c0_10], %19 {strides = array<i32>} : memref<256x8xf32, #tpu.memory_space<vmem>>, vector<256x8xf32>,
    %c0_11 = arith.constant 0 : index
    %c0_12 = arith.constant 0 : index
    %21 = vector.load %arg5[%c0_11, %c0_12] : memref<16x32xbf16, #tpu.memory_space<vmem>>, vector<16x32xbf16>
    %cst_13 = arith.constant dense<0.000000e+00> : vector<256x32xf32>
    %22 = tpu.matmul %17, %21, %cst_13 {dimension_numbers = #tpu.dot_dimension_numbers<[1], [0], [0], [1], [0, 0, 1, 1], [], []>} : vector<256x16xbf16>, vector<16x32xbf16>, vector<256x32xf32> -> vector<256x32xf32>
    %c0_14 = arith.constant 0 : index
    %c0_15 = arith.constant 0 : index
    %23 = vector.load %arg7[%c0_14, %c0_15] : memref<256x32xf32, #tpu.memory_space<vmem>>, vector<256x32xf32>
    tpu.vector_store %arg7[%c0_14, %c0_15], %22 {strides = array<i32>} : memref<256x32xf32, #tpu.memory_space<vmem>>, vector<256x32xf32>,
    %cst_16 = arith.constant dense<0.000000e+00> : vector<8xf32>
    %24 = vector.multi_reduction <add>, %19, %cst_16 [0] : vector<256x8xf32> to vector<8xf32>
    %25 = vector.shape_cast %24 : vector<8xf32> to vector<1x8xf32>
    %c0_17 = arith.constant 0 : index
    %c0_18 = arith.constant 0 : index
    %c0_19 = arith.constant 0 : index
    %26 = vector.load %arg8[%c0_17, %c0_18, %c0_19] : memref<1x2x8xf32, #tpu.memory_space<vmem>>, vector<1x1x8xf32>
    %27 = vector.shape_cast %26 : vector<1x1x8xf32> to vector<1x8xf32>
    %28 = vector.shape_cast %25 : vector<1x8xf32> to vector<1x1x8xf32>
    tpu.vector_store %arg8[%c0_17, %c0_18, %c0_19], %28 {strides = array<i32>} : memref<1x2x8xf32, #tpu.memory_space<vmem>>, vector<1x1x8xf32>,
    %29 = arith.mulf %19, %19 : vector<256x8xf32>
    %cst_20 = arith.constant dense<0.000000e+00> : vector<8xf32>
    %30 = vector.multi_reduction <add>, %29, %cst_20 [0] : vector<256x8xf32> to vector<8xf32>
    %31 = vector.shape_cast %30 : vector<8xf32> to vector<1x8xf32>
    %c0_21 = arith.constant 0 : index
    %c1 = arith.constant 1 : index
    %c0_22 = arith.constant 0 : index
    %32 = vector.load %arg8[%c0_21, %c1, %c0_22] : memref<1x2x8xf32, #tpu.memory_space<vmem>>, vector<1x1x8xf32>
    %33 = vector.shape_cast %32 : vector<1x1x8xf32> to vector<1x8xf32>
    %34 = vector.shape_cast %31 : vector<1x8xf32> to vector<1x1x8xf32>
    tpu.vector_store %arg8[%c0_21, %c1, %c0_22], %34 {strides = array<i32>} : memref<1x2x8xf32, #tpu.memory_space<vmem>>, vector<1x1x8xf32>,
    return
  }
  func.func @transform_0(%arg0: i32) -> (i32, i32) {
    %c0_i32 = arith.constant 0 : i32
    %c0_i32_0 = arith.constant 0 : i32
    return %arg0, %c0_i32 : i32, i32
  }
  func.func @transform_1(%arg0: i32) -> (i32, i32) {
    %c0_i32 = arith.constant 0 : i32
    %c0_i32_0 = arith.constant 0 : i32
    %c0_i32_1 = arith.constant 0 : i32
    return %c0_i32, %c0_i32_0 : i32, i32
  }
  func.func @transform_2(%arg0: i32) -> (i32, i32) {
    %c0_i32 = arith.constant 0 : i32
    %c0_i32_0 = arith.constant 0 : i32
    %c0_i32_1 = arith.constant 0 : i32
    return %c0_i32, %c0_i32_0 : i32, i32
  }
  func.func @transform_3(%arg0: i32) -> (i32, i32) {
    %c0_i32 = arith.constant 0 : i32
    %c0_i32_0 = arith.constant 0 : i32
    %c0_i32_1 = arith.constant 0 : i32
    return %c0_i32, %c0_i32_0 : i32, i32
  }
  func.func @transform_4(%arg0: i32) -> (i32, i32) {
    %c0_i32 = arith.constant 0 : i32
    %c0_i32_0 = arith.constant 0 : i32
    %c0_i32_1 = arith.constant 0 : i32
    return %c0_i32, %c0_i32_0 : i32, i32
  }
  func.func @transform_5(%arg0: i32) -> (i32, i32) {
    %c0_i32 = arith.constant 0 : i32
    %c0_i32_0 = arith.constant 0 : i32
    return %arg0, %c0_i32 : i32, i32
  }
  func.func @transform_6(%arg0: i32) -> (i32, i32) {
    %c0_i32 = arith.constant 0 : i32
    %c0_i32_0 = arith.constant 0 : i32
    return %arg0, %c0_i32 : i32, i32
  }
  func.func @transform_7(%arg0: i32) -> (i32, i32, i32) {
    %c0_i32 = arith.constant 0 : i32
    %c0_i32_0 = arith.constant 0 : i32
    %c0_i32_1 = arith.constant 0 : i32
    return %arg0, %c0_i32, %c0_i32_0 : i32, i32, i32
  }
}

module attributes {stable_mosaic.version = 11 : i64} {
  func.func @_stage3_kernel(%arg0: i32, %arg1: memref<128x8xf32, #tpu.memory_space<vmem>>, %arg2: memref<1x8xf32, #tpu.memory_space<vmem>>, %arg3: memref<1x8xf32, #tpu.memory_space<vmem>>, %arg4: memref<8x32xbf16, #tpu.memory_space<vmem>>, %arg5: memref<128x32xf32, #tpu.memory_space<vmem>>, %arg6: memref<128x32xf32, #tpu.memory_space<vmem>>) attributes {dimension_semantics = [#tpu.dimension_semantics<parallel>], iteration_bounds = array<i64: 1>, scalar_prefetch = 0 : i64, scratch_operands = 0 : i64, tpu.core_type = #tpu.core_type<tc>, window_params = [{transform_indices = @transform_0, window_bounds = array<i64: 128, 8>}, {pipeline_mode = #tpu.pipeline_mode<synchronous>, transform_indices = @transform_1, window_bounds = array<i64: 1, 8>}, {pipeline_mode = #tpu.pipeline_mode<synchronous>, transform_indices = @transform_2, window_bounds = array<i64: 1, 8>}, {pipeline_mode = #tpu.pipeline_mode<synchronous>, transform_indices = @transform_3, window_bounds = array<i64: 8, 32>}, {transform_indices = @transform_4, window_bounds = array<i64: 128, 32>}, {transform_indices = @transform_5, window_bounds = array<i64: 128, 32>}]} {
    %c0 = arith.constant 0 : index
    %c0_0 = arith.constant 0 : index
    %0 = vector.load %arg1[%c0, %c0_0] : memref<128x8xf32, #tpu.memory_space<vmem>>, vector<128x8xf32>
    %c0_1 = arith.constant 0 : index
    %c0_2 = arith.constant 0 : index
    %1 = vector.load %arg2[%c0_1, %c0_2] : memref<1x8xf32, #tpu.memory_space<vmem>>, vector<1x8xf32>
    %2 = vector.broadcast %1 : vector<1x8xf32> to vector<128x8xf32>
    %3 = arith.mulf %0, %2 : vector<128x8xf32>
    %c0_3 = arith.constant 0 : index
    %c0_4 = arith.constant 0 : index
    %4 = vector.load %arg3[%c0_3, %c0_4] : memref<1x8xf32, #tpu.memory_space<vmem>>, vector<1x8xf32>
    %5 = vector.broadcast %4 : vector<1x8xf32> to vector<128x8xf32>
    %6 = arith.addf %3, %5 : vector<128x8xf32>
    %cst = arith.constant 0.000000e+00 : f32
    %7 = vector.broadcast %cst : f32 to vector<128x8xf32>
    %8 = arith.maximumf %6, %7 : vector<128x8xf32>
    %9 = arith.truncf %8 : vector<128x8xf32> to vector<128x8xbf16>
    %c0_5 = arith.constant 0 : index
    %c0_6 = arith.constant 0 : index
    %10 = vector.load %arg4[%c0_5, %c0_6] : memref<8x32xbf16, #tpu.memory_space<vmem>>, vector<8x32xbf16>
    %cst_7 = arith.constant dense<0.000000e+00> : vector<128x32xf32>
    %11 = tpu.matmul %9, %10, %cst_7 {dimension_numbers = #tpu.dot_dimension_numbers<[1], [0], [0], [1], [0, 0, 1, 1], [], []>} : vector<128x8xbf16>, vector<8x32xbf16>, vector<128x32xf32> -> vector<128x32xf32>
    %c0_8 = arith.constant 0 : index
    %c0_9 = arith.constant 0 : index
    %12 = vector.load %arg5[%c0_8, %c0_9] : memref<128x32xf32, #tpu.memory_space<vmem>>, vector<128x32xf32>
    %13 = arith.addf %11, %12 : vector<128x32xf32>
    %c0_10 = arith.constant 0 : index
    %c0_11 = arith.constant 0 : index
    %14 = vector.load %arg6[%c0_10, %c0_11] : memref<128x32xf32, #tpu.memory_space<vmem>>, vector<128x32xf32>
    tpu.vector_store %arg6[%c0_10, %c0_11], %13 {strides = array<i32>} : memref<128x32xf32, #tpu.memory_space<vmem>>, vector<128x32xf32>,
    return
  }
  func.func @transform_0(%arg0: i32) -> (i32, i32) {
    %c0_i32 = arith.constant 0 : i32
    %c0_i32_0 = arith.constant 0 : i32
    return %arg0, %c0_i32 : i32, i32
  }
  func.func @transform_1(%arg0: i32) -> (i32, i32) {
    %c0_i32 = arith.constant 0 : i32
    %c0_i32_0 = arith.constant 0 : i32
    %c0_i32_1 = arith.constant 0 : i32
    return %c0_i32, %c0_i32_0 : i32, i32
  }
  func.func @transform_2(%arg0: i32) -> (i32, i32) {
    %c0_i32 = arith.constant 0 : i32
    %c0_i32_0 = arith.constant 0 : i32
    %c0_i32_1 = arith.constant 0 : i32
    return %c0_i32, %c0_i32_0 : i32, i32
  }
  func.func @transform_3(%arg0: i32) -> (i32, i32) {
    %c0_i32 = arith.constant 0 : i32
    %c0_i32_0 = arith.constant 0 : i32
    %c0_i32_1 = arith.constant 0 : i32
    return %c0_i32, %c0_i32_0 : i32, i32
  }
  func.func @transform_4(%arg0: i32) -> (i32, i32) {
    %c0_i32 = arith.constant 0 : i32
    %c0_i32_0 = arith.constant 0 : i32
    return %arg0, %c0_i32 : i32, i32
  }
  func.func @transform_5(%arg0: i32) -> (i32, i32) {
    %c0_i32 = arith.constant 0 : i32
    %c0_i32_0 = arith.constant 0 : i32
    return %arg0, %c0_i32 : i32, i32
  }
}

</mosaic_0001>

<bundles_post_ra>
// kernel: preact_bottleneck_forward.5
= control target key start
LH: loop header
LB: loop body
LE: loop exit
PB: predicated region body
PF: predicated region fallthrough
CT: control target
= control target key end

     0   :  { %vm150_vm0 = vcmask 1043456   ;;  %vm125_vm1 = vcmask 64512   ;;  %s562_s0 = inlined_call_operand.vmem [shape: f32[128,8], index: 0, kind: input, shape index: {}]   ;;  %s563_s1 = inlined_call_operand.vmem [shape: f32[1,8], index: 1, kind: input, shape index: {}]   ;;  %s564_s2 = inlined_call_operand.vmem [shape: f32[1,8], index: 2, kind: input, shape index: {}]   ;;  %s565_s3 = inlined_call_operand.vmem [shape: bf16[8,32], index: 3, kind: input, shape index: {}]   ;;  %s566_s4 = inlined_call_operand.vmem [shape: f32[128,32], index: 4, kind: input, shape index: {}]   ;;  %s567_s5 = inlined_call_operand.hbm [shape: f32[128,32], index: 5, kind: output, shape index: {}]  }
   0x1   :  { %v108_v0 = vld [vmem:[%s565_s3] sm:$0xf]  ;;  %v23_v2 = vld [vmem:[%s562_s0 + $0x8] sm:$0xff]  ;;  %v24_v11 = vld [vmem:[%s562_s0 + $0x10] sm:$0xff] }
   0x2   :  { %v22_v1 = vld [vmem:[%s562_s0] sm:$0xff]  ;;  %323 = vmatprep.subr.msk.bf16.mxu0 %vm150_vm0, %v108_v0  ;;  %324 = vmatprep.subr.msk.bf16.mxu1 %vm150_vm0, %v108_v0  ;;  %v152_v3 = vsel %vm150_vm0, %v108_v0, 0  ;;  %v31_v9 = vld [vmem:[%s562_s0 + $0x48] sm:$0xff]  ;;  %v25_v12 = vld [vmem:[%s562_s0 + $0x18] sm:$0xff] }
   0x3   :  { %v397_v4 = vld [vmem:[%s563_s1] ss:$0 sm:$0xff]  ;;  %304 = vmatpush3.bf16.msra.mxu0 %v152_v3  ;;  %322 = vmatpush3.bf16.msra.mxu1 %v152_v3  ;;  %v32_v16 = vld [vmem:[%s562_s0 + $0x50] sm:$0xff]  ;;  %v33_v17 = vld [vmem:[%s562_s0 + $0x58] sm:$0xff] }
   0x4   :  { %v402_v5 = vld [vmem:[%s564_s2] ss:$0 sm:$0xff]  ;;  %v45_v7 = vmul.f32 %v397_v4, %v22_v1  ;;  %v46_v8 = vmul.f32 %v397_v4, %v23_v2  ;;  %v54_v13 = vmul.f32 %v397_v4, %v31_v9  ;;  %v47_v14 = vmul.f32 %v397_v4, %v24_v11  ;;  %v27_v27 = vld [vmem:[%s562_s0 + $0x28] sm:$0xff]  ;;  %v28_v38 = vld [vmem:[%s562_s0 + $0x30] sm:$0xff] }
   0x5   :  { %v30_v6 = vld [vmem:[%s562_s0 + $0x40] sm:$0xff]  ;;  %v48_v15 = vmul.f32 %v397_v4, %v25_v12  ;;  %v55_v21 = vmul.f32 %v397_v4, %v32_v16  ;;  %v56_v25 = vmul.f32 %v397_v4, %v33_v17  ;;  %v35_v33 = vld [vmem:[%s562_s0 + $0x68] sm:$0xff] }
   0x6   :  { %v53_v10 = vmul.f32 %v397_v4, %v30_v6  ;;  %v68_v18 = vadd.f32 %v402_v5, %v45_v7  ;;  %v69_v19 = vadd.f32 %v402_v5, %v46_v8  ;;  %v77_v22 = vadd.f32 %v402_v5, %v54_v13  ;;  %v26_v26 = vld [vmem:[%s562_s0 + $0x20] sm:$0xff] }
   0x7   :  { %v70_v23 = vadd.f32 %v402_v5, %v47_v14  ;;  %v71_v24 = vadd.f32 %v402_v5, %v48_v15  ;;  %v78_v31 = vadd.f32 %v402_v5, %v55_v21  ;;  %v34_v32 = vld [vmem:[%s562_s0 + $0x60] sm:$0xff]  ;;  %v79_v37 = vadd.f32 %v402_v5, %v56_v25 }
   0x8   :  { %v76_v20 = vadd.f32 %v402_v5, %v53_v10  ;;  %v84_v28 = vmax.f32 %v68_v18, 0.0  ;;  %v85_v29 = vmax.f32 %v69_v19, 0.0  ;;  %v93_v34 = vmax.f32 %v77_v22, 0.0 }
   0x9   :  { %v86_v35 = vmax.f32 %v70_v23, 0.0  ;;  %v87_v36 = vmax.f32 %v71_v24, 0.0 }
   0xa   :  { %v92_v30 = vmax.f32 %v76_v20, 0.0 }
   0xb   :  { %10 = vsyncpa [#allocation3], 0  ;;  %v100_v39 = vpack.c.bf16 %v85_v29, %v84_v28  ;;  %v94_v40 = vmax.f32 %v78_v31, 0.0  ;;  %v49_v41 = vmul.f32 %v397_v4, %v26_v26  ;;  %v50_v42 = vmul.f32 %v397_v4, %v27_v27  ;;  %v29_v43 = vld [vmem:[%s562_s0 + $0x38] sm:$0xff]  ;;  %v36_v52 = vld [vmem:[%s562_s0 + $0x70] sm:$0xff]  ;;  %s352_s3 = smov [#allocation2]  }
   0xc   :  { %v104_v44 = vpack.c.bf16 %v93_v34, %v92_v30  ;;  %v101_v45 = vpack.c.bf16 %v87_v36, %v86_v35  ;;  %v95_v46 = vmax.f32 %v79_v37, 0.0  ;;  %v57_v47 = vmul.f32 %v397_v4, %v34_v32  ;;  %v37_v53 = vld [vmem:[%s562_s0 + $0x78] sm:$0xff]  ;;  %v119_v15 = vld [vmem:[%s566_s4 + $0x50] sm:$0xff]  ;;  %v117_v19 = vld [vmem:[%s566_s4 + $0x40] sm:$0xff]  ;;  %s273_s28 = sshll.u32 %s352_s3, 4  ;;  %s274_s28 = int_to_ptr.vmem [resolvable:$true] %s273_s28 }
   0xd   :  { %305 = vmatprep.mubr.msk.bf16.mxu0 %vm125_vm1, %v100_v39  ;;  %v72_v48 = vadd.f32 %v402_v5, %v49_v41  ;;  %v73_v49 = vadd.f32 %v402_v5, %v50_v42  ;;  %v58_v50 = vmul.f32 %v397_v4, %v35_v33  ;;  %v51_v51 = vmul.f32 %v397_v4, %v28_v38  ;;  %v112_v16 = vld [vmem:[%s566_s4 + $0x18] sm:$0xff]  ;;  %v110_v20 = vld [vmem:[%s566_s4 + $0x8] sm:$0xff]  ;;  %v115_v36 = vld [vmem:[%s566_s4 + $0x30] sm:$0xff]  ;;  %p333_p1 = scmp.lt.s32.totalorder %s274_s28, %s274_s28 }
   0xe   :  { %313 = vmatprep.mubr.msk.bf16.mxu1 %vm125_vm1, %v104_v44  ;;  %306 = vmatmul.mubr.msk.bf16.vlgmr.msra.gmra.mrb[0].mxu0 %vm125_vm1, %v101_v45  ;;  %v105_v54 = vpack.c.bf16 %v95_v46, %v94_v40  ;;  %v80_v55 = vadd.f32 %v402_v5, %v57_v47  ;;  %v52_v56 = vmul.f32 %v397_v4, %v29_v43  ;;  %vm251_vm2 = vcmask 261120   ;;  %v120_v24 = vld [vmem:[%s566_s4 + $0x58] sm:$0xff]  ;;  %v118_v29 = vld [vmem:[%s566_s4 + $0x48] sm:$0xff]  ;;  %v113_v37 = vld [vmem:[%s566_s4 + $0x20] sm:$0xff] }
   0xf   :  { %v88_v57 = vmax.f32 %v72_v48, 0.0  ;;  %v89_v58 = vmax.f32 %v73_v49, 0.0  ;;  %v81_v59 = vadd.f32 %v402_v5, %v58_v50  ;;  %v74_v60 = vadd.f32 %v402_v5, %v51_v51  ;;  %v123_v39 = vld [vmem:[%s566_s4 + $0x70] sm:$0xff]  ;;  %v116_v40 = vld [vmem:[%s566_s4 + $0x38] sm:$0xff]  ;;  %v121_v43 = vld [vmem:[%s566_s4 + $0x60] sm:$0xff] }
  0x10   :  { %314 = vmatmul.mubr.msk.bf16.vlgmr.msra.gmra.mrb[0].mxu1 %vm125_vm1, %v105_v54  ;;  %v96_v61 = vmax.f32 %v80_v55, 0.0  ;;  %v75_v62 = vadd.f32 %v402_v5, %v52_v56  ;;  %v59_v63 = vmul.f32 %v397_v4, %v36_v52  ;;  %v60_v0 = vmul.f32 %v397_v4, %v37_v53  ;;  %v111_v4 = vld [vmem:[%s566_s4 + $0x10] sm:$0xff]  ;;  %v114_v44 = vld [vmem:[%s566_s4 + $0x28] sm:$0xff]  ;;  %v124_v48 = vld [vmem:[%s566_s4 + $0x78] sm:$0xff] }
  0x11   :  { %v102_v1 = vpack.c.bf16 %v89_v58, %v88_v57  ;;  %v97_v2 = vmax.f32 %v81_v59, 0.0  ;;  %v90_v3 = vmax.f32 %v74_v60, 0.0  ;;  %v122_v53 = vld [vmem:[%s566_s4 + $0x68] sm:$0xff] }
  0x12   :  { %v91_v6 = vmax.f32 %v75_v62, 0.0  ;;  %v82_v7 = vadd.f32 %v402_v5, %v59_v63  ;;  %v83_v8 = vadd.f32 %v402_v5, %v60_v0  ;;  %v109_v5 = vld [vmem:[%s566_s4] sm:$0xff]  ;;  %s328_s4 = scalar_lea.vmem %s274_s28, 2048 }
  0x13   :  { %309 = vmatprep.mubr.msk.bf16.mxu0 %vm125_vm1, %v102_v1  ;;  %v106_v9 = vpack.c.bf16 %v97_v2, %v96_v61  ;;  %p329_p0 = scmp.ne.s32.totalorder %s274_s28, %s328_s4  ;;  %p334_p2 = scmp.lt.s32.totalorder %s328_s4, %s328_s4 }
  0x14   :  { %v103_v10 = vpack.c.bf16 %v91_v6, %v90_v3  ;;  %v98_v11 = vmax.f32 %v82_v7, 0.0  ;;  %v99_v12 = vmax.f32 %v83_v8, 0.0 }
  0x15   :  { %317 = vmatprep.mubr.msk.bf16.mxu1 %vm125_vm1, %v106_v9  ;;  %p335_p3 = por %p334_p2, %p333_p1 }
  0x16   :  { %310 = vmatmul.mubr.msk.bf16.gmra.mrb[4].mxu0 %vm125_vm1, %v103_v10  ;;  %v107_v13 = vpack.c.bf16 %v99_v12, %v98_v11 }
  0x17   :  { %p336_p4 = pnand %p335_p3, %p329_p0 }
  0x18   :  { %318 = vmatmul.mubr.msk.bf16.gmra.mrb[4].mxu1 %vm125_vm1, %v107_v13 }
  0xe1   :  { %v307_v14 = vpop.f32.mrb[0].mxu0 }
  0xe2   :  { %v197_v17 = vadd.f32 %v307_v14, %v111_v4  ;;  %v188_v18 = vpop.f32.mrb[1].mxu0 }
  0xe3   :  { %v315_v21 = vpop.f32.mrb[0].mxu1  ;;  %v189_v22 = vadd.f32 %v188_v18, %v109_v5  ;;  %v308_v23 = vpop.f32.mrb[2].mxu0 }
  0xe4   :  { %254 = vst.msk [vmem:[#allocation2 + $0x10] sm:$0xff] %vm251_vm2, %v197_v17  ;;  %v229_v25 = vadd.f32 %v315_v21, %v119_v15  ;;  %v220_v26 = vpop.f32.mrb[1].mxu1  ;;  %v200_v27 = vadd.f32 %v308_v23, %v112_v16  ;;  %v191_v28 = vpop.f32.mrb[3].mxu0 }
  0xe5   :  { %252 = vst.msk [vmem:[#allocation2] sm:$0xff] %vm251_vm2, %v189_v22  ;;  %v221_v30 = vadd.f32 %v220_v26, %v117_v19  ;;  %v316_v31 = vpop.f32.mrb[2].mxu1  ;;  %v192_v32 = vadd.f32 %v191_v28, %v110_v20 }
  0xe6   :  { %262 = vst.msk [vmem:[#allocation2 + $0x50] sm:$0xff] %vm251_vm2, %v229_v25  ;;  %255 = vst.msk [vmem:[#allocation2 + $0x18] sm:$0xff] %vm251_vm2, %v200_v27  ;;  %v232_v33 = vadd.f32 %v316_v31, %v120_v24  ;;  %v223_v34 = vpop.f32.mrb[3].mxu1 }
  0xe7   :  { %260 = vst.msk [vmem:[#allocation2 + $0x40] sm:$0xff] %vm251_vm2, %v221_v30  ;;  %253 = vst.msk [vmem:[#allocation2 + $0x8] sm:$0xff] %vm251_vm2, %v192_v32  ;;  %v224_v35 = vadd.f32 %v223_v34, %v118_v29 }
  0xe8   :  { %263 = vst.msk [vmem:[#allocation2 + $0x58] sm:$0xff] %vm251_vm2, %v232_v33 }
  0xe9   :  { %261 = vst.msk [vmem:[#allocation2 + $0x48] sm:$0xff] %vm251_vm2, %v224_v35  ;;  %v311_v38 = vpop.f32.mrb[4].mxu0 }
  0xea   :  { %v213_v41 = vadd.f32 %v311_v38, %v115_v36  ;;  %v204_v42 = vpop.f32.mrb[5].mxu0 }
  0xeb   :  { %v319_v45 = vpop.f32.mrb[4].mxu1  ;;  %v205_v46 = vadd.f32 %v204_v42, %v113_v37  ;;  %v312_v47 = vpop.f32.mrb[6].mxu0 }
  0xec   :  { %258 = vst.msk [vmem:[#allocation2 + $0x30] sm:$0xff] %vm251_vm2, %v213_v41  ;;  %v245_v49 = vadd.f32 %v319_v45, %v123_v39  ;;  %v236_v50 = vpop.f32.mrb[5].mxu1  ;;  %v216_v51 = vadd.f32 %v312_v47, %v116_v40  ;;  %v207_v52 = vpop.f32.mrb[7].mxu0 }
  0xed   :  { %256 = vst.msk [vmem:[#allocation2 + $0x20] sm:$0xff] %vm251_vm2, %v205_v46  ;;  %v237_v54 = vadd.f32 %v236_v50, %v121_v43  ;;  %v320_v55 = vpop.f32.mrb[6].mxu1  ;;  %v208_v56 = vadd.f32 %v207_v52, %v114_v44 }
  0xee   :  { %266 = vst.msk [vmem:[#allocation2 + $0x70] sm:$0xff] %vm251_vm2, %v245_v49  ;;  %259 = vst.msk [vmem:[#allocation2 + $0x38] sm:$0xff] %vm251_vm2, %v216_v51  ;;  %v248_v57 = vadd.f32 %v320_v55, %v124_v48  ;;  %v239_v58 = vpop.f32.mrb[7].mxu1 }
  0xef   :  { %264 = vst.msk [vmem:[#allocation2 + $0x60] sm:$0xff] %vm251_vm2, %v237_v54  ;;  %257 = vst.msk [vmem:[#allocation2 + $0x28] sm:$0xff] %vm251_vm2, %v208_v56  ;;  %v240_v59 = vadd.f32 %v239_v58, %v122_v53 }
  0xf0   :  { %267 = vst.msk [vmem:[#allocation2 + $0x78] sm:$0xff] %vm251_vm2, %v248_v57 }
  0xf1   :  { %265 = vst.msk [vmem:[#allocation2 + $0x68] sm:$0xff] %vm251_vm2, %v240_v59 }
  0xf2   :  { %339 = shalt.err (!%p336_p4)
}
  0xf3   :  { %s340_s2 = scalar_lea.hbm %s567_s5, 2048 }
  0xf4   :  { %p341_p5 = scmp.ne.s32.totalorder %s567_s5, %s340_s2  ;;  %p344_p6 = scmp.lt.u32.totalorder %s340_s2, %s567_s5 }
  0xf6   :  { %p346_p7 = pnand %p344_p6, %p341_p5 }
  0xf8   :  { %349 = shalt.err (!%p346_p7)
}
  0xf9   :  { %s353_s11 = smov 128   ;;  %s354_s12 = smov 8  }
  0xfa   :  { %279 = dma.vmem_to_hbm [thread:$0]  %s274_s28, 2048, %s567_s5, [#allocation3], %s353_s11, %s353_s11, %s354_s12  }
  0xfb   :  { %350 = dma.done.wait [#allocation3], 2048  }
  0xfc   :  { %351 = vsyncadd [#allocation3], 4294965248 }
  0xfd   :  { %283 = vsyncpa [#allocation3], 1 }

// kernel: preact_bottleneck_forward.4
= control target key start
LH: loop header
LB: loop body
LE: loop exit
PB: predicated region body
PF: predicated region fallthrough
CT: control target
= control target key end

     0   :  { %s1317_s18 = smov 0   ;;  %s1741_s0 = inlined_call_operand.vmem [shape: f32[2,16,16,8], index: 0, kind: input, shape index: {}]   ;;  %s1742_s1 = inlined_call_operand.vmem [shape: f32[1,8], index: 1, kind: input, shape index: {}]   ;;  %s1743_s2 = inlined_call_operand.vmem [shape: f32[1,8], index: 2, kind: input, shape index: {}]   ;;  %s1744_s3 = inlined_call_operand.vmem [shape: bf16[9,8,8], index: 3, kind: input, shape index: {}]   ;;  %s1745_s4 = inlined_call_operand.vmem [shape: f32[2,8,8,8], index: 4, kind: output, shape index: {0}]   ;;  %s1746_s5 = inlined_call_operand.vmem [shape: f32[2,2,8], index: 5, kind: output, shape index: {1}]  }
   0x1 LB: > { %s1076_s19 = sadd.s32 4294967295, %s1270_s18   ;;  %p1080_p0 = scmp.ge.s32.totalorder %s1270_s18, 1  ;;  %s1270_s18 = sphi %s1317_s18, %s16_s18  }
   0x2   : > { %p190_p1 = scmp.lt.s32.totalorder %s1270_s18, 3 }
   0x4   : > { %p191_p2 = pnand %p1080_p0, %p190_p1 }
   0x5   : > { %vm379_vm0 = vcmask (!%p191_p2), 64512   ;;  %v1328_v0 = vld [vmem:[%s1744_s3] sm:$0xf] (!%p191_p2)  ;;  %v1333_v1 = vld [vmem:[%s1744_s3 + $0x4] sm:$0xf] (!%p191_p2)  ;;  %v1284_v2 = vmov (!%p191_p2), 0.0  }
   0x6   : > { %194 = sbr.rel (%p191_p2) target bundleno = 339 (0x153), region = 36  ;;  %384 = vst.msk [vmem:[#allocation2 + $0x18] sm:$0xff] (!%p191_p2), %vm379_vm0, %v1284_v2  ;;  %380 = vst.msk [vmem:[#allocation2] sm:$0xff] (!%p191_p2), %vm379_vm0, %v1284_v2  ;;  %v1410_v3 = vld [vmem:[%s1744_s3 + $0x8] sm:$0xf] (!%p191_p2)  ;;  %vm382_vm1 = vcmask (!%p191_p2), 58368  }
   0x7   : > { %381 = vst.msk [vmem:[#allocation2 + $0x8] sm:$0xff] (!%p191_p2), %vm379_vm0, %v1284_v2  ;;  %385 = vst.msk [vmem:[#allocation2 + $0x20] sm:$0xff] (!%p191_p2), %vm379_vm0, %v1284_v2  ;;  %v1415_v4 = vld [vmem:[%s1744_s3 + $0xc] sm:$0xf] (!%p191_p2)  ;;  %v1420_v5 = vld [vmem:[%s1744_s3 + $0x10] sm:$0xf] (!%p191_p2) }
   0x8   : > { %387 = vst.msk [vmem:[#allocation2 + $0x30] sm:$0xff] (!%p191_p2), %vm379_vm0, %v1284_v2  ;;  %388 = vst.msk [vmem:[#allocation2 + $0x38] sm:$0xff] (!%p191_p2), %vm379_vm0, %v1284_v2  ;;  %v1425_v6 = vld [vmem:[%s1744_s3 + $0x14] sm:$0xf] (!%p191_p2)  ;;  %v1430_v7 = vld [vmem:[%s1744_s3 + $0x18] sm:$0xf] (!%p191_p2) }
   0x9   : > { %390 = vst.msk [vmem:[#allocation2 + $0x48] sm:$0xff] (!%p191_p2), %vm379_vm0, %v1284_v2  ;;  %391 = vst.msk [vmem:[#allocation2 + $0x50] sm:$0xff] (!%p191_p2), %vm379_vm0, %v1284_v2  ;;  %v1435_v8 = vld [vmem:[%s1744_s3 + $0x1c] sm:$0xf] (!%p191_p2)  ;;  %v1440_v9 = vld [vmem:[%s1744_s3 + $0x20] sm:$0xf] (!%p191_p2) }
   0xa   : > { %393 = vst.msk [vmem:[#allocation2 + $0x60] sm:$0xff] (!%p191_p2), %vm379_vm0, %v1284_v2  ;;  %394 = vst.msk [vmem:[#allocation2 + $0x68] sm:$0xff] (!%p191_p2), %vm379_vm0, %v1284_v2  ;;  %p1444_p3 = scmp.lt.s32.totalorder (!%p191_p2), %s1076_s19, 1  ;;  %v1491_v10 = vld [vmem:[%s1742_s1] ss:$0 sm:$0xff] (!%p191_p2) }
   0xb   : > { %396 = vst.msk [vmem:[#allocation2 + $0x78] sm:$0xff] (!%p191_p2), %vm379_vm0, %v1284_v2  ;;  %397 = vst.msk [vmem:[#allocation2 + $0x80] sm:$0xff] (!%p191_p2), %vm379_vm0, %v1284_v2  ;;  %v1506_v11 = vld [vmem:[%s1743_s2] ss:$0 sm:$0xff] (!%p191_p2) }
   0xc   : > { %399 = vst.msk [vmem:[#allocation2 + $0x90] sm:$0xff] (!%p191_p2), %vm379_vm0, %v1284_v2  ;;  %400 = vst.msk [vmem:[#allocation2 + $0x98] sm:$0xff] (!%p191_p2), %vm379_vm0, %v1284_v2 }
   0xd   : > { %402 = vst.msk [vmem:[#allocation2 + $0xa8] sm:$0xff] %vm379_vm0, %v1284_v2  ;;  %403 = vst.msk [vmem:[#allocation2 + $0xb0] sm:$0xff] %vm379_vm0, %v1284_v2  ;;  %s1751_s19 = smov (!%p1444_p3, %s1076_s19), 1 }
   0xe   : > { %405 = vst.msk [vmem:[#allocation2 + $0xc0] sm:$0xff] %vm379_vm0, %v1284_v2  ;;  %406 = vst.msk [vmem:[#allocation2 + $0xc8] sm:$0xff] %vm379_vm0, %v1284_v2  ;;  %s1114_s14 = sshll.u32 %s1751_s19, 8  ;;  %s1115_s15 = sshll.u32 %s1751_s19, 6 }
   0xf   : > { %408 = vst.msk [vmem:[#allocation2 + $0xd8] sm:$0xff] %vm379_vm0, %v1284_v2  ;;  %409 = vst.msk [vmem:[#allocation2 + $0xe0] sm:$0xff] %vm379_vm0, %v1284_v2  ;;  %s1496_s22 = scalar_lea.vmem %s1741_s0, %s1114_s14  ;;  %s1501_s25 = scalar_lea.vmem %s1745_s4, %s1115_s15 }
  0x10   : > { %411 = vst.msk [vmem:[#allocation2 + $0xf0] sm:$0xff] %vm379_vm0, %v1284_v2  ;;  %412 = vst.msk [vmem:[#allocation2 + $0xf8] sm:$0xff] %vm379_vm0, %v1284_v2  ;;  %s1085_s28 = sshll.u32 %s1751_s19, 1  ;;  %v237_v12 = vld [vmem:[%s1496_s22] sm:$0xff]  ;;  %v238_v13 = vld [vmem:[%s1496_s22 + $0x8] sm:$0xff]  ;;  %s1645_s19 = smov 0  }
  0x11   : > { %414 = vst.msk [vmem:[#allocation2 + $0x108] sm:$0xff] %vm379_vm0, %v1284_v2  ;;  %415 = vst.msk [vmem:[#allocation2 + $0x110] sm:$0xff] %vm379_vm0, %v1284_v2  ;;  %v239_v14 = vld [vmem:[%s1496_s22 + $0x10] sm:$0xff]  ;;  %s1514_s6 = scalar_lea.vmem %s1746_s5, %s1085_s28  ;;  %v276_v15 = vmul.f32 %v1491_v10, %v237_v12  ;;  %v277_v16 = vmul.f32 %v1491_v10, %v238_v13  ;;  %v240_v18 = vld [vmem:[%s1496_s22 + $0x18] sm:$0xff] }
  0x12   : > { %417 = vst.msk [vmem:[#allocation2 + $0x120] sm:$0xff] %vm379_vm0, %v1284_v2  ;;  %418 = vst.msk [vmem:[#allocation2 + $0x128] sm:$0xff] %vm379_vm0, %v1284_v2  ;;  %v278_v17 = vmul.f32 %v1491_v10, %v239_v14  ;;  %v241_v19 = vld [vmem:[%s1496_s22 + $0x20] sm:$0xff]  ;;  %v242_v20 = vld [vmem:[%s1496_s22 + $0x28] sm:$0xff]  ;;  %v279_v21 = vmul.f32 %v1491_v10, %v240_v18 }
  0x13   : > { %420 = vst.msk [vmem:[#allocation2 + $0x138] sm:$0xff] %vm379_vm0, %v1284_v2  ;;  %421 = vst.msk [vmem:[#allocation2 + $0x140] sm:$0xff] %vm379_vm0, %v1284_v2  ;;  %v280_v22 = vmul.f32 %v1491_v10, %v241_v19  ;;  %v281_v23 = vmul.f32 %v1491_v10, %v242_v20  ;;  %v243_v24 = vld [vmem:[%s1496_s22 + $0x30] sm:$0xff]  ;;  %v244_v25 = vld [vmem:[%s1496_s22 + $0x38] sm:$0xff]  ;;  %v315_v26 = vadd.f32 %v1506_v11, %v276_v15 }
  0x14   : > { %423 = vst.msk [vmem:[#allocation2 + $0x150] sm:$0xff] %vm379_vm0, %v1284_v2  ;;  %424 = vst.msk [vmem:[#allocation2 + $0x158] sm:$0xff] %vm379_vm0, %v1284_v2  ;;  %v316_v27 = vadd.f32 %v1506_v11, %v277_v16  ;;  %v317_v28 = vadd.f32 %v1506_v11, %v278_v17  ;;  %v282_v29 = vmul.f32 %v1491_v10, %v243_v24  ;;  %v245_v34 = vld [vmem:[%s1496_s22 + $0x40] sm:$0xff]  ;;  %v246_v35 = vld [vmem:[%s1496_s22 + $0x48] sm:$0xff] }
  0x15   : > { %426 = vst.msk [vmem:[#allocation2 + $0x168] sm:$0xff] %vm379_vm0, %v1284_v2  ;;  %427 = vst.msk [vmem:[#allocation2 + $0x170] sm:$0xff] %vm379_vm0, %v1284_v2  ;;  %v318_v30 = vadd.f32 %v1506_v11, %v279_v21  ;;  %v319_v31 = vadd.f32 %v1506_v11, %v280_v22  ;;  %v320_v32 = vadd.f32 %v1506_v11, %v281_v23  ;;  %v247_v36 = vld [vmem:[%s1496_s22 + $0x50] sm:$0xff]  ;;  %v347_v37 = vmax.f32 %v315_v26, 0.0  ;;  %v248_v41 = vld [vmem:[%s1496_s22 + $0x58] sm:$0xff] }
  0x16   : > { %429 = vst.msk [vmem:[#allocation2 + $0x180] sm:$0xff] %vm379_vm0, %v1284_v2  ;;  %430 = vst.msk [vmem:[#allocation2 + $0x188] sm:$0xff] %vm379_vm0, %v1284_v2  ;;  %v283_v33 = vmul.f32 %v1491_v10, %v244_v25  ;;  %v348_v38 = vmax.f32 %v316_v27, 0.0  ;;  %v349_v39 = vmax.f32 %v317_v28, 0.0  ;;  %v321_v40 = vadd.f32 %v1506_v11, %v282_v29  ;;  %v249_v42 = vld [vmem:[%s1496_s22 + $0x60] sm:$0xff]  ;;  %v250_v43 = vld [vmem:[%s1496_s22 + $0x68] sm:$0xff] }
  0x17   : > { %432 = vst.msk [vmem:[#allocation2 + $0x198] sm:$0xff] %vm379_vm0, %v1284_v2  ;;  %433 = vst.msk [vmem:[#allocation2 + $0x1a0] sm:$0xff] %vm379_vm0, %v1284_v2  ;;  %v350_v44 = vmax.f32 %v318_v30, 0.0  ;;  %v351_v45 = vmax.f32 %v319_v31, 0.0  ;;  %v352_v46 = vmax.f32 %v320_v32, 0.0  ;;  %v251_v48 = vld [vmem:[%s1496_s22 + $0x70] sm:$0xff]  ;;  %v284_v50 = vmul.f32 %v1491_v10, %v245_v34 }
  0x18   : > { %386 = vst.msk [vmem:[#allocation2 + $0x28] sm:$0x3] %vm382_vm1, %v1284_v2  ;;  %383 = vst.msk [vmem:[#allocation2 + $0x10] sm:$0x3] %vm382_vm1, %v1284_v2  ;;  %v322_v47 = vadd.f32 %v1506_v11, %v283_v33  ;;  %v353_v49 = vmax.f32 %v321_v40, 0.0  ;;  %v285_v51 = vmul.f32 %v1491_v10, %v246_v35  ;;  %v286_v52 = vmul.f32 %v1491_v10, %v247_v36  ;;  %v252_v53 = vld [vmem:[%s1496_s22 + $0x78] sm:$0xff] }
  0x19   : > { %389 = vst.msk [vmem:[#allocation2 + $0x40] sm:$0x3] %vm382_vm1, %v1284_v2  ;;  %392 = vst.msk [vmem:[#allocation2 + $0x58] sm:$0x3] %vm382_vm1, %v1284_v2  ;;  %v287_v55 = vmul.f32 %v1491_v10, %v248_v41  ;;  %v288_v56 = vmul.f32 %v1491_v10, %v249_v42  ;;  %v289_v57 = vmul.f32 %v1491_v10, %v250_v43  ;;  %v253_v13 = vld [vmem:[%s1496_s22 + $0x80] sm:$0xff]  ;;  %v254_v14 = vld [vmem:[%s1496_s22 + $0x88] sm:$0xff] }
  0x1a   : > { %395 = vst.msk [vmem:[#allocation2 + $0x70] sm:$0x3] %vm382_vm1, %v1284_v2  ;;  %398 = vst.msk [vmem:[#allocation2 + $0x88] sm:$0x3] %vm382_vm1, %v1284_v2  ;;  %v354_v54 = vmax.f32 %v322_v47, 0.0  ;;  %v323_v58 = vadd.f32 %v1506_v11, %v284_v50  ;;  %v324_v59 = vadd.f32 %v1506_v11, %v285_v51  ;;  %v325_v60 = vadd.f32 %v1506_v11, %v286_v52  ;;  %v255_v15 = vld [vmem:[%s1496_s22 + $0x90] sm:$0xff] }
  0x1b   : > { %401 = vst.msk [vmem:[#allocation2 + $0xa0] sm:$0x3] %vm382_vm1, %v1284_v2  ;;  %404 = vst.msk [vmem:[#allocation2 + $0xb8] sm:$0x3] %vm382_vm1, %v1284_v2  ;;  %v290_v61 = vmul.f32 %v1491_v10, %v251_v48  ;;  %v326_v62 = vadd.f32 %v1506_v11, %v287_v55  ;;  %v327_v63 = vadd.f32 %v1506_v11, %v288_v56  ;;  %v256_v20 = vld [vmem:[%s1496_s22 + $0x98] sm:$0xff]  ;;  %v257_v21 = vld [vmem:[%s1496_s22 + $0xa0] sm:$0xff] }
  0x1c   : > { %407 = vst.msk [vmem:[#allocation2 + $0xd0] sm:$0x3] %vm382_vm1, %v1284_v2  ;;  %410 = vst.msk [vmem:[#allocation2 + $0xe8] sm:$0x3] %vm382_vm1, %v1284_v2  ;;  %v291_v12 = vmul.f32 %v1491_v10, %v252_v53  ;;  %v355_v16 = vmax.f32 %v323_v58, 0.0  ;;  %v356_v17 = vmax.f32 %v324_v59, 0.0  ;;  %v292_v29 = vmul.f32 %v1491_v10, %v253_v13 }
  0x1d   : > { %413 = vst.msk [vmem:[#allocation2 + $0x100] sm:$0x3] %vm382_vm1, %v1284_v2  ;;  %416 = vst.msk [vmem:[#allocation2 + $0x118] sm:$0x3] %vm382_vm1, %v1284_v2  ;;  %v357_v18 = vmax.f32 %v325_v60, 0.0  ;;  %v329_v19 = vadd.f32 %v1506_v11, %v290_v61  ;;  %v258_v22 = vld [vmem:[%s1496_s22 + $0xa8] sm:$0xff]  ;;  %v293_v30 = vmul.f32 %v1491_v10, %v254_v14  ;;  %v294_v31 = vmul.f32 %v1491_v10, %v255_v15 }
  0x1e   : > { %419 = vst.msk [vmem:[#allocation2 + $0x130] sm:$0x3] %vm382_vm1, %v1284_v2  ;;  %422 = vst.msk [vmem:[#allocation2 + $0x148] sm:$0x3] %vm382_vm1, %v1284_v2  ;;  %v358_v23 = vmax.f32 %v326_v62, 0.0  ;;  %v359_v24 = vmax.f32 %v327_v63, 0.0  ;;  %v330_v26 = vadd.f32 %v1506_v11, %v291_v12  ;;  %v295_v34 = vmul.f32 %v1491_v10, %v256_v20 }
  0x1f   : > { %425 = vst.msk [vmem:[#allocation2 + $0x160] sm:$0x3] %vm382_vm1, %v1284_v2  ;;  %428 = vst.msk [vmem:[#allocation2 + $0x178] sm:$0x3] %vm382_vm1, %v1284_v2  ;;  %v259_v27 = vld [vmem:[%s1496_s22 + $0xb0] sm:$0xff]  ;;  %v361_v28 = vmax.f32 %v329_v19, 0.0  ;;  %v296_v35 = vmul.f32 %v1491_v10, %v257_v21  ;;  %v297_v36 = vmul.f32 %v1491_v10, %v258_v22 }
  0x20   : > { %431 = vst.msk [vmem:[#allocation2 + $0x190] sm:$0x3] %vm382_vm1, %v1284_v2  ;;  %434 = vst.msk [vmem:[#allocation2 + $0x1a8] sm:$0x3] %vm382_vm1, %v1284_v2  ;;  %v328_v2 = vadd.f32 %v1506_v11, %v289_v57  ;;  %v260_v32 = vld [vmem:[%s1496_s22 + $0xb8] sm:$0xff]  ;;  %v362_v33 = vmax.f32 %v330_v26, 0.0  ;;  %v298_v40 = vmul.f32 %v1491_v10, %v259_v27  ;;  %v334_v41 = vadd.f32 %v1506_v11, %v295_v34 }
  0x21   : > { %436 = vst.msk [vmem:[#allocation2 + $0x19] sm:$0xff] %vm379_vm0, %v347_v37  ;;  %437 = vst.msk [vmem:[#allocation2 + $0x21] sm:$0xff] %vm379_vm0, %v348_v38  ;;  %v331_v37 = vadd.f32 %v1506_v11, %v292_v29  ;;  %v332_v38 = vadd.f32 %v1506_v11, %v293_v30  ;;  %v335_v42 = vadd.f32 %v1506_v11, %v296_v35  ;;  %v263_v47 = vld [vmem:[%s1496_s22 + $0xd0] sm:$0xff]  ;;  %v264_v52 = vld [vmem:[%s1496_s22 + $0xd8] sm:$0xff] }
  0x22   : > { %438 = vst.msk [vmem:[#allocation2 + $0x31] sm:$0xff] %vm379_vm0, %v349_v39  ;;  %439 = vst.msk [vmem:[#allocation2 + $0x39] sm:$0xff] %vm379_vm0, %v350_v44  ;;  %v360_v25 = vmax.f32 %v328_v2, 0.0  ;;  %v333_v39 = vadd.f32 %v1506_v11, %v294_v31  ;;  %v336_v43 = vadd.f32 %v1506_v11, %v297_v36  ;;  %v299_v44 = vmul.f32 %v1491_v10, %v260_v32  ;;  %v265_v53 = vld [vmem:[%s1496_s22 + $0xe0] sm:$0xff]  ;;  %v267_v59 = vld [vmem:[%s1496_s22 + $0xf0] sm:$0xff] }
  0x23   : > { %440 = vst.msk [vmem:[#allocation2 + $0x49] sm:$0xff] %vm379_vm0, %v351_v45  ;;  %441 = vst.msk [vmem:[#allocation2 + $0x51] sm:$0xff] %vm379_vm0, %v352_v46  ;;  %v261_v45 = vld [vmem:[%s1496_s22 + $0xc0] sm:$0xff]  ;;  %v262_v46 = vld [vmem:[%s1496_s22 + $0xc8] sm:$0xff]  ;;  %v363_v48 = vmax.f32 %v331_v37, 0.0  ;;  %v337_v51 = vadd.f32 %v1506_v11, %v298_v40  ;;  %v366_v55 = vmax.f32 %v334_v41, 0.0  ;;  %v302_v63 = vmul.f32 %v1491_v10, %v263_v47 }
  0x24   : > { %442 = vst.msk [vmem:[#allocation2 + $0x61] sm:$0xff] %vm379_vm0, %v353_v49  ;;  %443 = vst.msk [vmem:[#allocation2 + $0x69] sm:$0xff] %vm379_vm0, %v354_v54  ;;  %v364_v49 = vmax.f32 %v332_v38, 0.0  ;;  %v365_v50 = vmax.f32 %v333_v39, 0.0  ;;  %v266_v54 = vld [vmem:[%s1496_s22 + $0xe8] sm:$0xff]  ;;  %v367_v56 = vmax.f32 %v335_v42, 0.0  ;;  %v338_v58 = vadd.f32 %v1506_v11, %v299_v44 }
  0x25   : > { %444 = vst.msk [vmem:[#allocation2 + $0x79] sm:$0xff] %vm379_vm0, %v355_v16  ;;  %445 = vst.msk [vmem:[#allocation2 + $0x81] sm:$0xff] %vm379_vm0, %v356_v17  ;;  %v368_v57 = vmax.f32 %v336_v43, 0.0  ;;  %v369_v60 = vmax.f32 %v337_v51, 0.0  ;;  %v300_v61 = vmul.f32 %v1491_v10, %v261_v45  ;;  %v301_v62 = vmul.f32 %v1491_v10, %v262_v46  ;;  %v268_v2 = vld [vmem:[%s1496_s22 + $0xf8] sm:$0xff] }
  0x26   : > { %446 = vst.msk [vmem:[#allocation2 + $0x91] sm:$0xff] %vm379_vm0, %v357_v18  ;;  %447 = vst.msk [vmem:[#allocation2 + $0x99] sm:$0xff] %vm379_vm0, %v358_v23  ;;  %v370_v12 = vmax.f32 %v338_v58, 0.0  ;;  %v303_v13 = vmul.f32 %v1491_v10, %v264_v52  ;;  %v304_v14 = vmul.f32 %v1491_v10, %v265_v53  ;;  %v305_v15 = vmul.f32 %v1491_v10, %v266_v54 }
  0x27   : > { %448 = vst.msk [vmem:[#allocation2 + $0xa9] sm:$0xff] %vm379_vm0, %v359_v24  ;;  %449 = vst.msk [vmem:[#allocation2 + $0xb1] sm:$0xff] %vm379_vm0, %v360_v25  ;;  %v339_v16 = vadd.f32 %v1506_v11, %v300_v61  ;;  %v340_v17 = vadd.f32 %v1506_v11, %v301_v62  ;;  %v341_v18 = vadd.f32 %v1506_v11, %v302_v63 }
  0x28   : > { %450 = vst.msk [vmem:[#allocation2 + $0xc1] sm:$0xff] %vm379_vm0, %v361_v28  ;;  %451 = vst.msk [vmem:[#allocation2 + $0xc9] sm:$0xff] %vm379_vm0, %v362_v33  ;;  %v306_v19 = vmul.f32 %v1491_v10, %v267_v59  ;;  %v342_v20 = vadd.f32 %v1506_v11, %v303_v13  ;;  %v343_v21 = vadd.f32 %v1506_v11, %v304_v14  ;;  %v1641_v33 = vmov 0.0  }
  0x29   : > { %452 = vst.msk [vmem:[#allocation2 + $0xd9] sm:$0xff] %vm379_vm0, %v363_v48  ;;  %453 = vst.msk [vmem:[#allocation2 + $0xe1] sm:$0xff] %vm379_vm0, %v364_v49  ;;  %v344_v22 = vadd.f32 %v1506_v11, %v305_v15  ;;  %v307_v23 = vmul.f32 %v1491_v10, %v268_v2  ;;  %v371_v24 = vmax.f32 %v339_v16, 0.0  ;;  %v372_v25 = vmax.f32 %v340_v17, 0.0 }
  0x2a   : > { %454 = vst.msk [vmem:[#allocation2 + $0xf1] sm:$0xff] %vm379_vm0, %v365_v50  ;;  %455 = vst.msk [vmem:[#allocation2 + $0xf9] sm:$0xff] %vm379_vm0, %v366_v55  ;;  %v373_v26 = vmax.f32 %v341_v18, 0.0  ;;  %v345_v27 = vadd.f32 %v1506_v11, %v306_v19  ;;  %v374_v28 = vmax.f32 %v342_v20, 0.0  ;;  %v375_v29 = vmax.f32 %v343_v21, 0.0 }
  0x2b   : > { %456 = vst.msk [vmem:[#allocation2 + $0x109] sm:$0xff] %vm379_vm0, %v367_v56  ;;  %457 = vst.msk [vmem:[#allocation2 + $0x111] sm:$0xff] %vm379_vm0, %v368_v57  ;;  %v376_v30 = vmax.f32 %v344_v22, 0.0  ;;  %v346_v31 = vadd.f32 %v1506_v11, %v307_v23  ;;  %v1643_v11 = vmov 0.0  }
  0x2c   : > { %458 = vst.msk [vmem:[#allocation2 + $0x121] sm:$0xff] %vm379_vm0, %v369_v60  ;;  %459 = vst.msk [vmem:[#allocation2 + $0x129] sm:$0xff] %vm379_vm0, %v370_v12  ;;  %v377_v32 = vmax.f32 %v345_v27, 0.0 }
  0x2d   : > { %460 = vst.msk [vmem:[#allocation2 + $0x139] sm:$0xff] %vm379_vm0, %v371_v24  ;;  %461 = vst.msk [vmem:[#allocation2 + $0x141] sm:$0xff] %vm379_vm0, %v372_v25  ;;  %v378_v10 = vmax.f32 %v346_v31, 0.0 }
  0x2e   : > { %462 = vst.msk [vmem:[#allocation2 + $0x151] sm:$0xff] %vm379_vm0, %v373_v26  ;;  %463 = vst.msk [vmem:[#allocation2 + $0x159] sm:$0xff] %vm379_vm0, %v374_v28 }
  0x2f   : > { %464 = vst.msk [vmem:[#allocation2 + $0x169] sm:$0xff] %vm379_vm0, %v375_v29  ;;  %465 = vst.msk [vmem:[#allocation2 + $0x171] sm:$0xff] %vm379_vm0, %v376_v30 }
  0x30   : > { %466 = vst.msk [vmem:[#allocation2 + $0x181] sm:$0xff] %vm379_vm0, %v377_v32  ;;  %467 = vst.msk [vmem:[#allocation2 + $0x189] sm:$0xff] %vm379_vm0, %v378_v10 }
  0x31 LB: >> { %vm496_vm2 = vcmask 1043456   ;;  %v1285_v34 = vmov 0.0   ;;  %s1089_s7 = smul.u32 48, %s1282_s19  ;;  %vm1286_vm3 = vmmov 0   ;;  %s1111_s9 = sshll.u32 %s1282_s19, 3  ;;  %s1282_s19 = sphi %s1645_s19, %s482_s19   ;;  %v1278_v11 = vphi %v1643_v11, %v1749_v11   ;;  %v1274_v33 = vphi %v1641_v33, %v1748_v33  }
  0x32   : >> { %1158 = vmatprep.subr.bf16.mxu0 %v1285_v34  ;;  %1134 = vmatprep.subr.bf16.mxu1 %v1285_v34  ;;  %v695_v35 = vsel %vm496_vm2, %v1420_v5, 0  ;;  %v498_v36 = vsel %vm496_vm2, %v1333_v1, 0  ;;  %v745_v41 = vsel %vm496_vm2, %v1425_v6, 0  ;;  %v544_v42 = vsel %vm496_vm2, %v1328_v0, 0  ;;  %s941_s10 = scalar_lea.vmem %s1501_s25, %s1111_s9  ;;  %s482_s19 = sadd.s32 1, %s1282_s19  }
  0x33   : >> { %1159 = vmatpush3.bf16.msra.mxu0 %v695_v35  ;;  %1135 = vmatpush3.bf16.msra.mxu1 %v498_v36  ;;  %s1669_s8 = scalar_lea.vmem [#allocation2], %s1089_s7  ;;  %v797_v47 = vsel %vm496_vm2, %v1430_v7, 0  ;;  %v593_v48 = vsel %vm496_vm2, %v1410_v3, 0  ;;  %v847_v53 = vsel %vm496_vm2, %v1435_v8, 0  ;;  %v645_v54 = vsel %vm496_vm2, %v1415_v4, 0  ;;  %p479_p4 = scmp.ge.s32.totalorder %s482_s19, 8  }
  0x34   : >> { %1136 = vmatprep.mubr.msk.bf16.mxu1 %vm1286_vm3, %v1285_v34  ;;  %1160 = vmatprep.mubr.msk.bf16.mxu0 %vm1286_vm3, %v1285_v34  ;;  %v897_v59 = vsel %vm496_vm2, %v1440_v9, 0  ;;  %vm960_vm4 = vcmask (%p479_p4), 57344  }
  0x35   : >> { %1164 = vmatprep.subr.bf16.mxu0 %v1285_v34  ;;  %1140 = vmatprep.subr.bf16.mxu1 %v1285_v34 }
  0x37   : >> { %v1090_v37 = vld [vmem:[%s1669_s8 + $0x1] ss:$2 sm:$0xff]  ;;  %v488_v43 = vld [vmem:[%s1669_s8] ss:$2 sm:$0xff]  ;;  %v1105_v50 = vld [vmem:[%s1669_s8 + $0x30] ss:$2 sm:$0xff] }
  0x38   : >> { %v1099_v38 = vld [vmem:[%s1669_s8 + $0x19] ss:$2 sm:$0xff]  ;;  %v492_v39 = vpack.c.bf16 %v1090_v37, %v1090_v37  ;;  %v1101_v44 = vld [vmem:[%s1669_s8 + $0x1a] ss:$2 sm:$0xff]  ;;  %v489_v45 = vpack.c.bf16 %v488_v43, %v488_v43  ;;  %v792_v52 = vpack.c.bf16 %v1105_v50, %v1105_v50 }
  0x39   : >> { %v690_v40 = vpack.c.bf16 %v1099_v38, %v1099_v38  ;;  %v740_v46 = vpack.c.bf16 %v1101_v44, %v1101_v44  ;;  %v1093_v49 = vld [vmem:[%s1669_s8 + $0x2] ss:$2 sm:$0xff]  ;;  %v1107_v56 = vld [vmem:[%s1669_s8 + $0x31] ss:$2 sm:$0xff]  ;;  %v1109_v60 = vld [vmem:[%s1669_s8 + $0x32] ss:$2 sm:$0xff] }
  0x3a   : >> { %1137 = vmatmul.mubr.msk.bf16.vlgmr.msra.gmra.mrb[0].mxu1 %vm379_vm0, %v492_v39  ;;  %v588_v51 = vpack.c.bf16 %v1093_v49, %v1093_v49  ;;  %v1097_v55 = vld [vmem:[%s1669_s8 + $0x18] ss:$2 sm:$0xff]  ;;  %v842_v58 = vpack.c.bf16 %v1107_v56, %v1107_v56  ;;  %v892_v61 = vpack.c.bf16 %v1109_v60, %v1109_v60 }
  0x3b   : >> { %1161 = vmatmul.mubr.msk.bf16.vlgmr.msra.gmra.mrb[0].mxu0 %vm379_vm0, %v690_v40  ;;  %1141 = vmatpush3.bf16.msra.mxu1 %v544_v42  ;;  %v640_v57 = vpack.c.bf16 %v1097_v55, %v1097_v55 }
  0x3c   : >> { %1165 = vmatpush3.bf16.msra.mxu0 %v745_v41  ;;  %1142 = vmatprep.mubr.msk.bf16.mxu1 %vm1286_vm3, %v1285_v34 }
  0x3d   : >> { %1166 = vmatprep.mubr.msk.bf16.mxu0 %vm1286_vm3, %v1285_v34  ;;  %1170 = vmatprep.subr.bf16.mxu0 %v1285_v34 }
  0x3e   : >> { %1146 = vmatprep.subr.bf16.mxu1 %v1285_v34 }
  0x46   : >> { %1143 = vmatmul.mubr.msk.bf16.vlgmr.msra.gmra.mrb[0].mxu1 %vm379_vm0, %v489_v45 }
  0x47   : >> { %1167 = vmatmul.mubr.msk.bf16.vlgmr.msra.gmra.mrb[0].mxu0 %vm379_vm0, %v740_v46  ;;  %1147 = vmatpush3.bf16.msra.mxu1 %v593_v48 }
  0x48   : >> { %1171 = vmatpush3.bf16.msra.mxu0 %v797_v47  ;;  %1148 = vmatprep.mubr.msk.bf16.mxu1 %vm1286_vm3, %v1285_v34 }
  0x49   : >> { %1172 = vmatprep.mubr.msk.bf16.mxu0 %vm1286_vm3, %v1285_v34  ;;  %1176 = vmatprep.subr.bf16.mxu0 %v1285_v34 }
  0x4a   : >> { %1152 = vmatprep.subr.bf16.mxu1 %v1285_v34 }
  0x52   : >> { %1149 = vmatmul.mubr.msk.bf16.vlgmr.msra.gmra.mrb[0].mxu1 %vm379_vm0, %v588_v51 }
  0x53   : >> { %1173 = vmatmul.mubr.msk.bf16.vlgmr.msra.gmra.mrb[0].mxu0 %vm379_vm0, %v792_v52  ;;  %1153 = vmatpush3.bf16.msra.mxu1 %v645_v54 }
  0x54   : >> { %1177 = vmatpush3.bf16.msra.mxu0 %v847_v53  ;;  %1154 = vmatprep.mubr.msk.bf16.mxu1 %vm1286_vm3, %v1285_v34 }
  0x55   : >> { %1178 = vmatprep.mubr.msk.bf16.mxu0 %vm1286_vm3, %v1285_v34  ;;  %1182 = vmatprep.subr.bf16.mxu0 %v1285_v34 }
  0x5e   : >> { %1155 = vmatmul.mubr.msk.bf16.vlgmr.msra.gmra.mrb[0].mxu1 %vm379_vm0, %v640_v57 }
  0x5f   : >> { %1179 = vmatmul.mubr.msk.bf16.vlgmr.msra.gmra.mrb[0].mxu0 %vm379_vm0, %v842_v58 }
  0x60   : >> { %1183 = vmatpush3.bf16.msra.mxu0 %v897_v59  ;;  %1184 = vmatprep.mubr.msk.bf16.mxu0 %vm1286_vm3, %v1285_v34 }
  0x6b   : >> { %1185 = vmatmul.mubr.msk.bf16.vlgmr.msra.gmra.mrb[0].mxu0 %vm379_vm0, %v892_v61 }
 0x131   : >> { %v681_v62 = vpop.f32.mrb[0].mxu1 }
 0x132   : >> { %v1156_v63 = vpop.f32.mrb[1].mxu1 }
 0x133   : >> { %v684_v2 = vpop.f32.mrb[2].mxu1 }
 0x134   : >> { %v1157_v12 = vpop.f32.mrb[3].mxu1 }
 0x13e   : >> { %v933_v13 = vpop.f32.mrb[0].mxu0 }
 0x13f   : >> { %v1188_v14 = vadd.f32 %v933_v13, %v681_v62  ;;  %v1186_v15 = vpop.f32.mrb[1].mxu0 }
 0x140   : >> { %v936_v16 = vpop.f32.mrb[2].mxu0 }
 0x141   : >> { %942 = vst.msk [vmem:[%s941_s10] sm:$0xff] %vm379_vm0, %v1188_v14  ;;  %v943_v17 = vsel %vm379_vm0, %v1188_v14, 0.0  ;;  %v951_v18 = vmul.f32 %v1188_v14, %v1188_v14  ;;  %v1187_v19 = vpop.f32.mrb[3].mxu0 }
 0x142   : >> { %v944_v20 = vrot.slane %v943_v17, 4 }
 0x143   : >> { %v952_v21 = vsel %vm379_vm0, %v951_v18, 0.0 }
 0x144   : >> { %v945_v22 = vadd.f32 %v944_v20, %v943_v17  ;;  %v953_v23 = vrot.slane %v952_v21, 4 }
 0x146   : >> { %v946_v24 = vrot.slane %v945_v22, 2  ;;  %v954_v25 = vadd.f32 %v953_v23, %v952_v21 }
 0x148   : >> { %v947_v26 = vadd.f32 %v946_v24, %v945_v22  ;;  %v955_v27 = vrot.slane %v954_v25, 2 }
 0x14a   : >> { %v948_v28 = vrot.slane %v947_v26, 1  ;;  %v956_v29 = vadd.f32 %v955_v27, %v954_v25 }
 0x14c   : >> { %v949_v30 = vadd.f32 %v948_v28, %v947_v26  ;;  %v957_v31 = vrot.slane %v956_v29, 1  ;;  %481 = sbr.rel (!%p479_p4) target bundleno = 49 (0x31), region = 96 }
 0x14e   : >> { %v950_v32 = vadd.f32 %v1278_v11, %v949_v30   ;;  %v958_v10 = vadd.f32 %v957_v31, %v956_v29 }
 0x150   : >> { %v959_v34 = vadd.f32 %v1274_v33, %v958_v10   ;;  %v1749_v11 = vmov %v950_v32  ;;  %961 = vst.msk [vmem:[%s1514_s6] sm:$0x1] (%p479_p4), %vm960_vm4, %v950_v32 }
 0x152   : >> { %v1748_v33 = vmov %v959_v34  ;;  %962 = vst.msk [vmem:[%s1514_s6 + $0x1] sm:$0x1] (%p479_p4), %vm960_vm4, %v959_v34 }
 0x153 PF: > { %s16_s18 = sadd.s32 1, %s1270_s18  }
 0x154   : > { %p13_p5 = scmp.ge.s32.totalorder %s16_s18, 4  }
 0x156   :  { %15 = sbr.rel (!%p13_p5) target bundleno = 1 (0x1), region = 107 }

// kernel: preact_bottleneck_forward.3
= control target key start
LH: loop header
LB: loop body
LE: loop exit
PB: predicated region body
PF: predicated region fallthrough
CT: control target
= control target key end

     0   :  { %s1554_s24 = smov 0   ;;  %s2008_s0 = inlined_call_operand.vmem [shape: f32[512,16], index: 0, kind: input, shape index: {}]   ;;  %s2009_s1 = inlined_call_operand.vmem [shape: f32[1,16], index: 1, kind: input, shape index: {}]   ;;  %s2010_s2 = inlined_call_operand.vmem [shape: f32[1,16], index: 2, kind: input, shape index: {}]   ;;  %s2011_s3 = inlined_call_operand.vmem [shape: bf16[16,8], index: 3, kind: input, shape index: {}]   ;;  %s2012_s4 = inlined_call_operand.vmem [shape: bf16[16,32], index: 4, kind: input, shape index: {}]   ;;  %s2013_s5 = inlined_call_operand.vmem [shape: f32[512,8], index: 5, kind: output, shape index: {0}]   ;;  %s2014_s6 = inlined_call_operand.vmem [shape: f32[512,32], index: 6, kind: output, shape index: {1}]   ;;  %s2015_s7 = inlined_call_operand.vmem [shape: f32[2,2,8], index: 7, kind: output, shape index: {2}]  }
   0x1 LB: > { %s1560_s25 = sadd.s32 4294967295, %s1512_s24   ;;  %p1347_p0 = scmp.ge.s32.totalorder %s1512_s24, 1  ;;  %s1512_s24 = sphi %s1554_s24, %s18_s24  }
   0x2   : > { %p243_p1 = scmp.lt.s32.totalorder %s1512_s24, 3 }
   0x4   : > { %p244_p2 = pnand %p1347_p0, %p243_p1 }
   0x5   : > { %v1504_v0 = vld [vmem:[%s2011_s3] sm:$0xff] (!%p244_p2)   ;;  %s1348_s28 = sshll.u32 (!%p244_p2), %s1560_s25, 5  ;;  %v449_v1 = vlaneseq (!%p244_p2)  ;;  %s1357_s29 = sshll.u32 (!%p244_p2), %s1560_s25, 8  ;;  %vm604_vm1 = vcmask (!%p244_p2), 130048  }
   0x6   : > { %247 = sbr.rel (%p244_p2) target bundleno = 320 (0x140), region = 40  ;;  %p285_p3 = scmp.lt.s32.totalorder (!%p244_p2), %s1348_s28, 63  ;;  %1428 = vmatprep.subr.bf16.mxu0 (!%p244_p2), %v1504_v0  ;;  %v1571_v3 = vstv (!%p244_p2), %s1357_s29  ;;  %v1505_v4 = vld [vmem:[%s2012_s4] sm:$0xff] (!%p244_p2)  }
   0x7   : > { %v1569_v2 = vshrl.u32 (!%p244_p2), %v449_v1, 7  ;;  %1429 = vmatpush3.bf16.msra.mxu0 (!%p244_p2), %v1504_v0  ;;  %v1579_v5 = vld [vmem:[%s2009_s1] ss:$0 sm:$0xff] (!%p244_p2)  ;;  %1462 = vmatprep.subr.bf16.mxu1 (!%p244_p2), %v1505_v4  ;;  %p302_p4 = scmp.lt.s32.totalorder (!%p244_p2), %s1560_s25, 1 }
   0x8   : > { %v1601_v14 = vld [vmem:[%s2010_s2] ss:$0 sm:$0xff] (!%p244_p2)  ;;  %1463 = vmatpush3.bf16.msra.mxu1 (!%p244_p2), %v1505_v4 }
   0x9   : > { %v451_v6 = vadd.s32 (!%p244_p2), 8, %v1569_v2  ;;  %v484_v7 = vadd.s32 (!%p244_p2), %v1571_v3, %v1569_v2  ;;  %v452_v8 = vadd.s32 (!%p244_p2), 16, %v1569_v2  ;;  %v453_v9 = vadd.s32 (!%p244_p2), 24, %v1569_v2 }
   0xa   : > { %v454_v10 = vadd.s32 (!%p244_p2), 32, %v1569_v2  ;;  %v455_v11 = vadd.s32 (!%p244_p2), 40, %v1569_v2  ;;  %v456_v12 = vadd.s32 (!%p244_p2), 48, %v1569_v2  ;;  %v457_v13 = vadd.s32 (!%p244_p2), 56, %v1569_v2 }
   0xb   : > { %v485_v15 = vadd.s32 (!%p244_p2), %v1571_v3, %v451_v6  ;;  %vm516_vm0 = vcmp.lt.s32.totalorder (!%p244_p2), %v484_v7, 512  ;;  %v486_v16 = vadd.s32 (!%p244_p2), %v1571_v3, %v452_v8  ;;  %v487_v17 = vadd.s32 (!%p244_p2), %v1571_v3, %v453_v9 }
   0xc   : > { %v488_v21 = vadd.s32 (!%p244_p2), %v1571_v3, %v454_v10  ;;  %v489_v22 = vadd.s32 (!%p244_p2), %v1571_v3, %v455_v11  ;;  %v490_v23 = vadd.s32 (!%p244_p2), %v1571_v3, %v456_v12  ;;  %v1613_v24 = vadd.s32 (!%p244_p2), %v1571_v3, %v457_v13 }
   0xd   : > { %s2017_s28 = smov (!%p285_p3, %s1348_s28), 63  ;;  %vm517_vm2 = vcmp.lt.s32.totalorder %v485_v15, 512  ;;  %vm518_vm3 = vcmp.lt.s32.totalorder %v486_v16, 512  ;;  %vm519_vm4 = vcmp.lt.s32.totalorder %v487_v17, 512  ;;  %v458_v8 = vadd.s32 64, %v1569_v2  ;;  %s2019_s25 = smov (!%p302_p4, %s1560_s25), 1 }
   0xe   : > { %s1586_s11 = sshll.u32 %s2017_s28, 3  ;;  %vm520_vm5 = vcmp.lt.s32.totalorder %v488_v21, 512  ;;  %vm521_vm6 = vcmp.lt.s32.totalorder %v489_v22, 512  ;;  %vm522_vm7 = vcmp.lt.s32.totalorder %v490_v23, 512  ;;  %vm523_vm8 = vcmp.lt.s32.totalorder %v1613_v24, 512  ;;  %s1354_s23 = sshll.u32 %s2019_s25, 1 }
   0xf   : > { %s1596_s14 = scalar_lea.vmem %s2008_s0, %s1586_s11  ;;  %v459_v9 = vadd.s32 72, %v1569_v2  ;;  %v492_v17 = vadd.s32 %v1571_v3, %v458_v8  ;;  %s1800_s19 = scalar_lea.vmem %s2013_s5, %s1586_s11 }
  0x10   : > { %v307_v18 = vld [vmem:[%s1596_s14] sm:$0xff]  ;;  %v308_v19 = vld [vmem:[%s1596_s14 + $0x8] sm:$0xff]  ;;  %v309_v20 = vld [vmem:[%s1596_s14 + $0x10] sm:$0xff]  ;;  %s1806_s22 = scalar_lea.vmem %s2014_s6, %s1586_s11  ;;  %s305_s28 = scalar_lea.vmem %s2015_s7, %s1354_s23 }
  0x11   : > { %v346_v25 = vmul.f32 %v1579_v5, %v307_v18  ;;  %v347_v26 = vmul.f32 %v1579_v5, %v308_v19  ;;  %v310_v27 = vld [vmem:[%s1596_s14 + $0x18] sm:$0xff]  ;;  %v348_v28 = vmul.f32 %v1579_v5, %v309_v20  ;;  %v311_v29 = vld [vmem:[%s1596_s14 + $0x20] sm:$0xff]  ;;  %v312_v30 = vld [vmem:[%s1596_s14 + $0x28] sm:$0xff]  ;;  %v493_v18 = vadd.s32 %v1571_v3, %v459_v9 }
  0x12   : > { %v349_v31 = vmul.f32 %v1579_v5, %v310_v27  ;;  %v350_v32 = vmul.f32 %v1579_v5, %v311_v29  ;;  %v351_v36 = vmul.f32 %v1579_v5, %v312_v30  ;;  %v313_v37 = vld [vmem:[%s1596_s14 + $0x30] sm:$0xff]  ;;  %v314_v38 = vld [vmem:[%s1596_s14 + $0x38] sm:$0xff]  ;;  %v315_v53 = vld [vmem:[%s1596_s14 + $0x40] sm:$0xff]  ;;  %vm524_vm9 = vcmp.lt.s32.totalorder %v492_v17, 512 }
  0x13   : > { %v385_v33 = vadd.f32 %v1601_v14, %v346_v25  ;;  %v386_v34 = vadd.f32 %v1601_v14, %v347_v26  ;;  %v387_v35 = vadd.f32 %v1601_v14, %v348_v28  ;;  %v352_v47 = vmul.f32 %v1579_v5, %v313_v37  ;;  %v316_v58 = vld [vmem:[%s1596_s14 + $0x48] sm:$0xff]  ;;  %v317_v62 = vld [vmem:[%s1596_s14 + $0x50] sm:$0xff]  ;;  %v318_v63 = vld [vmem:[%s1596_s14 + $0x58] sm:$0xff] }
  0x14   : > { %v388_v39 = vadd.f32 %v1601_v14, %v349_v31  ;;  %v389_v40 = vadd.f32 %v1601_v14, %v350_v32  ;;  %v390_v44 = vadd.f32 %v1601_v14, %v351_v36  ;;  %v353_v48 = vmul.f32 %v1579_v5, %v314_v38  ;;  %v319_v23 = vld [vmem:[%s1596_s14 + $0x60] sm:$0xff]  ;;  %v320_v24 = vld [vmem:[%s1596_s14 + $0x68] sm:$0xff]  ;;  %v321_v31 = vld [vmem:[%s1596_s14 + $0x70] sm:$0xff] }
  0x15   : > { %v417_v41 = vmax.f32 %v385_v33, 0.0  ;;  %v418_v42 = vmax.f32 %v386_v34, 0.0  ;;  %v419_v43 = vmax.f32 %v387_v35, 0.0  ;;  %v391_v57 = vadd.f32 %v1601_v14, %v352_v47 }
  0x16   : > { %v420_v45 = vmax.f32 %v388_v39, 0.0  ;;  %v421_v46 = vmax.f32 %v389_v40, 0.0  ;;  %v422_v52 = vmax.f32 %v390_v44, 0.0  ;;  %v392_v61 = vadd.f32 %v1601_v14, %v353_v48  ;;  %v322_v40 = vld [vmem:[%s1596_s14 + $0x78] sm:$0xff] }
  0x17   : > { %v548_v49 = vsel %vm516_vm0, %v417_v41, 0.0  ;;  %v549_v50 = vsel %vm517_vm2, %v418_v42, 0.0  ;;  %v550_v51 = vsel %vm518_vm3, %v419_v43, 0.0  ;;  %v423_v1 = vmax.f32 %v391_v57, 0.0 }
  0x18   : > { %v580_v54 = vpack.c.bf16 %v549_v50, %v548_v49  ;;  %v551_v55 = vsel %vm519_vm4, %v420_v45, 0.0  ;;  %v552_v56 = vsel %vm520_vm5, %v421_v46, 0.0  ;;  %v553_v60 = vsel %vm521_vm6, %v422_v52, 0.0 }
  0x19   : > { %v581_v59 = vpack.c.bf16 %v551_v55, %v550_v51  ;;  %v582_v0 = vpack.c.bf16 %v553_v60, %v552_v56  ;;  %v354_v4 = vmul.f32 %v1579_v5, %v315_v53  ;;  %v424_v6 = vmax.f32 %v392_v61, 0.0  ;;  %v323_v51 = vld [vmem:[%s1596_s14 + $0x80] sm:$0xff] }
  0x1a   : > { %1430 = vmatprep.mubr.msk.bf16.mxu0 %vm604_vm1, %v580_v54  ;;  %1464 = vmatprep.mubr.msk.bf16.mxu1 %vm604_vm1, %v580_v54  ;;  %v355_v7 = vmul.f32 %v1579_v5, %v316_v58  ;;  %v554_v10 = vsel %vm522_vm7, %v423_v1, 0.0  ;;  %v356_v12 = vmul.f32 %v1579_v5, %v317_v62  ;;  %v357_v13 = vmul.f32 %v1579_v5, %v318_v63  ;;  %v324_v54 = vld [vmem:[%s1596_s14 + $0x88] sm:$0xff] }
  0x1b   : > { %1431 = vmatmul.mubr.msk.bf16.vlgmr.msra.gmra.mrb[0].mxu0 %vm604_vm1, %v581_v59  ;;  %1465 = vmatmul.mubr.msk.bf16.vlgmr.msra.gmra.mrb[0].mxu1 %vm604_vm1, %v581_v59  ;;  %v393_v11 = vadd.f32 %v1601_v14, %v354_v4  ;;  %v555_v15 = vsel %vm523_vm8, %v424_v6, 0.0  ;;  %vm525_vm10 = vcmp.lt.s32.totalorder %v493_v18, 512  ;;  %v460_v26 = vadd.s32 80, %v1569_v2  ;;  %v325_v59 = vld [vmem:[%s1596_s14 + $0x90] sm:$0xff] }
  0x1c   : > { %1434 = vmatprep.mubr.msk.bf16.mxu0 %vm604_vm1, %v582_v0  ;;  %1468 = vmatprep.mubr.msk.bf16.mxu1 %vm604_vm1, %v582_v0  ;;  %v394_v16 = vadd.f32 %v1601_v14, %v355_v7  ;;  %v583_v19 = vpack.c.bf16 %v555_v15, %v554_v10  ;;  %v395_v21 = vadd.f32 %v1601_v14, %v356_v12  ;;  %v461_v30 = vadd.s32 88, %v1569_v2  ;;  %v326_v0 = vld [vmem:[%s1596_s14 + $0x98] sm:$0xff] }
  0x1d   : > { %v425_v20 = vmax.f32 %v393_v11, 0.0  ;;  %v396_v22 = vadd.f32 %v1601_v14, %v357_v13  ;;  %v494_v33 = vadd.s32 %v1571_v3, %v460_v26  ;;  %v358_v34 = vmul.f32 %v1579_v5, %v319_v23  ;;  %v328_v23 = vld [vmem:[%s1596_s14 + $0xa8] sm:$0xff] }
  0x1e   : > { %v426_v25 = vmax.f32 %v394_v16, 0.0  ;;  %v427_v28 = vmax.f32 %v395_v21, 0.0  ;;  %v359_v35 = vmul.f32 %v1579_v5, %v320_v24  ;;  %v495_v37 = vadd.s32 %v1571_v3, %v461_v30 }
  0x1f   : > { %v556_v27 = vsel %vm524_vm9, %v425_v20, 0.0  ;;  %v428_v29 = vmax.f32 %v396_v22, 0.0  ;;  %v462_v38 = vadd.s32 96, %v1569_v2  ;;  %v463_v39 = vadd.s32 104, %v1569_v2  ;;  %v327_v22 = vld [vmem:[%s1596_s14 + $0xa0] sm:$0xff] }
  0x20   : > { %v557_v32 = vsel %vm525_vm10, %v426_v25, 0.0  ;;  %vm526_vm11 = vcmp.lt.s32.totalorder %v494_v33, 512  ;;  %v397_v41 = vadd.f32 %v1601_v14, %v358_v34  ;;  %v398_v42 = vadd.f32 %v1601_v14, %v359_v35 }
  0x21   : > { %v584_v36 = vpack.c.bf16 %v557_v32, %v556_v27  ;;  %v360_v43 = vmul.f32 %v1579_v5, %v321_v31  ;;  %vm527_vm12 = vcmp.lt.s32.totalorder %v495_v37, 512  ;;  %v558_v44 = vsel %vm526_vm11, %v427_v28, 0.0  ;;  %v329_v31 = vld [vmem:[%s1596_s14 + $0xb0] sm:$0xff]  ;;  %v330_v32 = vld [vmem:[%s1596_s14 + $0xb8] sm:$0xff] }
  0x22   : > { %v496_v45 = vadd.s32 %v1571_v3, %v462_v38  ;;  %v497_v46 = vadd.s32 %v1571_v3, %v463_v39  ;;  %v559_v47 = vsel %vm527_vm12, %v428_v29, 0.0  ;;  %v429_v48 = vmax.f32 %v397_v41, 0.0 }
  0x23   : > { %1435 = vmatmul.mubr.msk.bf16.gmra.mrb[4].mxu0 %vm604_vm1, %v583_v19  ;;  %1469 = vmatmul.mubr.msk.bf16.gmra.mrb[4].mxu1 %vm604_vm1, %v583_v19  ;;  %v430_v49 = vmax.f32 %v398_v42, 0.0  ;;  %v361_v50 = vmul.f32 %v1579_v5, %v322_v40  ;;  %v585_v52 = vpack.c.bf16 %v559_v47, %v558_v44  ;;  %v399_v53 = vadd.f32 %v1601_v14, %v360_v43 }
  0x24   : > { %1438 = vmatprep.mubr.msk.bf16.mxu0 %vm604_vm1, %v584_v36  ;;  %1472 = vmatprep.mubr.msk.bf16.mxu1 %vm604_vm1, %v584_v36  ;;  %vm528_vm13 = vcmp.lt.s32.totalorder %v496_v45, 512  ;;  %vm529_vm14 = vcmp.lt.s32.totalorder %v497_v46, 512  ;;  %v464_v58 = vadd.s32 112, %v1569_v2  ;;  %v465_v62 = vadd.s32 120, %v1569_v2 }
  0x25   : > { %v560_v55 = vsel %vm528_vm13, %v429_v48, 0.0  ;;  %v561_v56 = vsel %vm529_vm14, %v430_v49, 0.0  ;;  %v400_v57 = vadd.f32 %v1601_v14, %v361_v50  ;;  %v431_v61 = vmax.f32 %v399_v53, 0.0 }
  0x26   : > { %v586_v60 = vpack.c.bf16 %v561_v56, %v560_v55  ;;  %v362_v63 = vmul.f32 %v1579_v5, %v323_v51  ;;  %v498_v4 = vadd.s32 %v1571_v3, %v464_v58  ;;  %v363_v6 = vmul.f32 %v1579_v5, %v324_v54  ;;  %v331_v51 = vld [vmem:[%s1596_s14 + $0xc0] sm:$0xff]  ;;  %v332_v54 = vld [vmem:[%s1596_s14 + $0xc8] sm:$0xff] }
  0x27   : > { %v432_v1 = vmax.f32 %v400_v57, 0.0  ;;  %v466_v7 = vadd.s32 128, %v1569_v2  ;;  %v499_v8 = vadd.s32 %v1571_v3, %v465_v62  ;;  %v467_v10 = vadd.s32 136, %v1569_v2 }
  0x28   : > { %v401_v9 = vadd.f32 %v1601_v14, %v362_v63  ;;  %v364_v11 = vmul.f32 %v1579_v5, %v325_v59  ;;  %vm530_vm15 = vcmp.lt.s32.totalorder %v498_v4, 512  ;;  %v402_v12 = vadd.f32 %v1601_v14, %v363_v6  ;;  %v333_v59 = vld [vmem:[%s1596_s14 + $0xd0] sm:$0xff] }
  0x29   : > { %v500_v13 = vadd.s32 %v1571_v3, %v466_v7  ;;  %v365_v15 = vmul.f32 %v1579_v5, %v326_v0  ;;  %vm531_vm0 = vcmp.lt.s32.totalorder %v499_v8, 512  ;;  %v562_v16 = vsel %vm530_vm15, %v431_v61, 0.0  ;;  %v334_v0 = vld [vmem:[%s1596_s14 + $0xd8] sm:$0xff] }
  0x2a   : > { %v433_v17 = vmax.f32 %v401_v9, 0.0  ;;  %v501_v18 = vadd.s32 %v1571_v3, %v467_v10  ;;  %v563_v19 = vsel %vm531_vm0, %v432_v1, 0.0  ;;  %v434_v20 = vmax.f32 %v402_v12, 0.0 }
  0x2b   : > { %1439 = vmatmul.mubr.msk.bf16.gmra.mrb[8].mxu0 %vm604_vm1, %v585_v52  ;;  %1473 = vmatmul.mubr.msk.bf16.gmra.mrb[8].mxu1 %vm604_vm1, %v585_v52  ;;  %vm532_vm2 = vcmp.lt.s32.totalorder %v500_v13, 512  ;;  %v403_v21 = vadd.f32 %v1601_v14, %v364_v11  ;;  %v587_v24 = vpack.c.bf16 %v563_v19, %v562_v16  ;;  %v404_v26 = vadd.f32 %v1601_v14, %v365_v15 }
  0x2c   : > { %1442 = vmatprep.mubr.msk.bf16.mxu0 %vm604_vm1, %v586_v60  ;;  %1476 = vmatprep.mubr.msk.bf16.mxu1 %vm604_vm1, %v586_v60  ;;  %vm533_vm3 = vcmp.lt.s32.totalorder %v501_v18, 512  ;;  %v564_v25 = vsel %vm532_vm2, %v433_v17, 0.0  ;;  %v468_v29 = vadd.s32 144, %v1569_v2  ;;  %v469_v30 = vadd.s32 152, %v1569_v2 }
  0x2d   : > { %v565_v27 = vsel %vm533_vm3, %v434_v20, 0.0  ;;  %v435_v28 = vmax.f32 %v403_v21, 0.0  ;;  %v436_v34 = vmax.f32 %v404_v26, 0.0  ;;  %v366_v35 = vmul.f32 %v1579_v5, %v327_v22  ;;  %v335_v22 = vld [vmem:[%s1596_s14 + $0xe0] sm:$0xff] }
  0x2e   : > { %v588_v33 = vpack.c.bf16 %v565_v27, %v564_v25  ;;  %v367_v36 = vmul.f32 %v1579_v5, %v328_v23  ;;  %v502_v37 = vadd.s32 %v1571_v3, %v468_v29  ;;  %v503_v38 = vadd.s32 %v1571_v3, %v469_v30  ;;  %v336_v23 = vld [vmem:[%s1596_s14 + $0xe8] sm:$0xff] }
  0x2f   : > { %v470_v39 = vadd.s32 160, %v1569_v2  ;;  %v471_v40 = vadd.s32 168, %v1569_v2  ;;  %v405_v41 = vadd.f32 %v1601_v14, %v366_v35  ;;  %v368_v43 = vmul.f32 %v1579_v5, %v329_v31  ;;  %v337_v31 = vld [vmem:[%s1596_s14 + $0xf0] sm:$0xff] }
  0x30   : > { %v406_v42 = vadd.f32 %v1601_v14, %v367_v36  ;;  %v369_v44 = vmul.f32 %v1579_v5, %v330_v32  ;;  %vm534_vm4 = vcmp.lt.s32.totalorder %v502_v37, 512  ;;  %vm535_vm5 = vcmp.lt.s32.totalorder %v503_v38, 512  ;;  %v338_v32 = vld [vmem:[%s1596_s14 + $0xf8] sm:$0xff] }
  0x31   : > { %v504_v45 = vadd.s32 %v1571_v3, %v470_v39  ;;  %v505_v46 = vadd.s32 %v1571_v3, %v471_v40  ;;  %v566_v47 = vsel %vm534_vm4, %v435_v28, 0.0  ;;  %v567_v48 = vsel %vm535_vm5, %v436_v34, 0.0 }
  0x32   : > { %v437_v49 = vmax.f32 %v405_v41, 0.0  ;;  %v438_v50 = vmax.f32 %v406_v42, 0.0  ;;  %v589_v52 = vpack.c.bf16 %v567_v48, %v566_v47  ;;  %v407_v53 = vadd.f32 %v1601_v14, %v368_v43 }
  0x33   : > { %1443 = vmatmul.mubr.msk.bf16.gmra.mrb[12].mxu0 %vm604_vm1, %v587_v24  ;;  %1477 = vmatmul.mubr.msk.bf16.gmra.mrb[12].mxu1 %vm604_vm1, %v587_v24  ;;  %vm536_vm6 = vcmp.lt.s32.totalorder %v504_v45, 512  ;;  %vm537_vm7 = vcmp.lt.s32.totalorder %v505_v46, 512  ;;  %v408_v57 = vadd.f32 %v1601_v14, %v369_v44  ;;  %v472_v58 = vadd.s32 176, %v1569_v2 }
  0x34   : > { %1446 = vmatprep.mubr.msk.bf16.mxu0 %vm604_vm1, %v588_v33  ;;  %1480 = vmatprep.mubr.msk.bf16.mxu1 %vm604_vm1, %v588_v33  ;;  %v568_v55 = vsel %vm536_vm6, %v437_v49, 0.0  ;;  %v569_v56 = vsel %vm537_vm7, %v438_v50, 0.0  ;;  %v439_v61 = vmax.f32 %v407_v53, 0.0  ;;  %v473_v62 = vadd.s32 184, %v1569_v2 }
  0x35   : > { %v590_v60 = vpack.c.bf16 %v569_v56, %v568_v55  ;;  %v370_v63 = vmul.f32 %v1579_v5, %v331_v51  ;;  %v440_v1 = vmax.f32 %v408_v57, 0.0  ;;  %v506_v4 = vadd.s32 %v1571_v3, %v472_v58 }
  0x36   : > { %v371_v6 = vmul.f32 %v1579_v5, %v332_v54  ;;  %v474_v7 = vadd.s32 192, %v1569_v2  ;;  %v507_v8 = vadd.s32 %v1571_v3, %v473_v62  ;;  %v475_v10 = vadd.s32 200, %v1569_v2 }
  0x37   : > { %v409_v9 = vadd.f32 %v1601_v14, %v370_v63  ;;  %v372_v11 = vmul.f32 %v1579_v5, %v333_v59  ;;  %vm538_vm8 = vcmp.lt.s32.totalorder %v506_v4, 512  ;;  %v373_v15 = vmul.f32 %v1579_v5, %v334_v0 }
  0x38   : > { %v410_v12 = vadd.f32 %v1601_v14, %v371_v6  ;;  %v508_v13 = vadd.s32 %v1571_v3, %v474_v7  ;;  %vm539_vm9 = vcmp.lt.s32.totalorder %v507_v8, 512  ;;  %v570_v16 = vsel %vm538_vm8, %v439_v61, 0.0 }
  0x39   : > { %v441_v17 = vmax.f32 %v409_v9, 0.0  ;;  %v509_v18 = vadd.s32 %v1571_v3, %v475_v10  ;;  %v571_v19 = vsel %vm539_vm9, %v440_v1, 0.0  ;;  %v411_v21 = vadd.f32 %v1601_v14, %v372_v11 }
  0x3a   : > { %v442_v20 = vmax.f32 %v410_v12, 0.0  ;;  %vm540_vm10 = vcmp.lt.s32.totalorder %v508_v13, 512  ;;  %v591_v24 = vpack.c.bf16 %v571_v19, %v570_v16  ;;  %v412_v26 = vadd.f32 %v1601_v14, %v373_v15 }
  0x3b   : > { %1447 = vmatmul.mubr.msk.bf16.gmra.mrb[16].mxu0 %vm604_vm1, %v589_v52  ;;  %1481 = vmatmul.mubr.msk.bf16.gmra.mrb[16].mxu1 %vm604_vm1, %v589_v52  ;;  %vm541_vm11 = vcmp.lt.s32.totalorder %v509_v18, 512  ;;  %v572_v25 = vsel %vm540_vm10, %v441_v17, 0.0  ;;  %v443_v28 = vmax.f32 %v411_v21, 0.0  ;;  %v476_v29 = vadd.s32 208, %v1569_v2 }
  0x3c   : > { %1450 = vmatprep.mubr.msk.bf16.mxu0 %vm604_vm1, %v590_v60  ;;  %1484 = vmatprep.mubr.msk.bf16.mxu1 %vm604_vm1, %v590_v60  ;;  %v573_v27 = vsel %vm541_vm11, %v442_v20, 0.0  ;;  %v477_v30 = vadd.s32 216, %v1569_v2  ;;  %v444_v34 = vmax.f32 %v412_v26, 0.0  ;;  %v374_v35 = vmul.f32 %v1579_v5, %v335_v22 }
  0x3d   : > { %v592_v33 = vpack.c.bf16 %v573_v27, %v572_v25  ;;  %v375_v36 = vmul.f32 %v1579_v5, %v336_v23  ;;  %v510_v37 = vadd.s32 %v1571_v3, %v476_v29  ;;  %v478_v39 = vadd.s32 224, %v1569_v2 }
  0x3e   : > { %v511_v38 = vadd.s32 %v1571_v3, %v477_v30  ;;  %v479_v40 = vadd.s32 232, %v1569_v2  ;;  %v413_v41 = vadd.f32 %v1601_v14, %v374_v35  ;;  %v376_v43 = vmul.f32 %v1579_v5, %v337_v31 }
  0x3f   : > { %v414_v42 = vadd.f32 %v1601_v14, %v375_v36  ;;  %v377_v44 = vmul.f32 %v1579_v5, %v338_v32  ;;  %vm542_vm12 = vcmp.lt.s32.totalorder %v510_v37, 512  ;;  %v512_v45 = vadd.s32 %v1571_v3, %v478_v39 }
  0x40   : > { %vm543_vm13 = vcmp.lt.s32.totalorder %v511_v38, 512  ;;  %v513_v46 = vadd.s32 %v1571_v3, %v479_v40  ;;  %v574_v47 = vsel %vm542_vm12, %v443_v28, 0.0  ;;  %v445_v48 = vmax.f32 %v413_v41, 0.0 }
  0x41   : > { %v446_v49 = vmax.f32 %v414_v42, 0.0  ;;  %v575_v50 = vsel %vm543_vm13, %v444_v34, 0.0  ;;  %vm544_vm14 = vcmp.lt.s32.totalorder %v512_v45, 512  ;;  %v415_v5 = vadd.f32 %v1601_v14, %v376_v43 }
  0x42   : > { %vm545_vm15 = vcmp.lt.s32.totalorder %v513_v46, 512  ;;  %v576_v51 = vsel %vm544_vm14, %v445_v48, 0.0  ;;  %v416_v53 = vadd.f32 %v1601_v14, %v377_v44  ;;  %v480_v54 = vadd.s32 240, %v1569_v2 }
  0x43   : > { %1451 = vmatmul.mubr.msk.bf16.gmra.mrb[20].mxu0 %vm604_vm1, %v591_v24  ;;  %1485 = vmatmul.mubr.msk.bf16.gmra.mrb[20].mxu1 %vm604_vm1, %v591_v24  ;;  %v577_v52 = vsel %vm545_vm15, %v446_v49, 0.0  ;;  %v481_v55 = vadd.s32 248, %v1569_v2  ;;  %v593_v56 = vpack.c.bf16 %v575_v50, %v574_v47  ;;  %v447_v59 = vmax.f32 %v415_v5, 0.0 }
  0x44   : > { %1454 = vmatprep.mubr.msk.bf16.mxu0 %vm604_vm1, %v592_v33  ;;  %1488 = vmatprep.mubr.msk.bf16.mxu1 %vm604_vm1, %v592_v33  ;;  %v514_v57 = vadd.s32 %v1571_v3, %v480_v54  ;;  %v594_v58 = vpack.c.bf16 %v577_v52, %v576_v51  ;;  %v448_v60 = vmax.f32 %v416_v53, 0.0  ;;  %vm814_vm3 = vcmask 64512  }
  0x45   : > { %v515_v61 = vadd.s32 %v1571_v3, %v481_v55  ;;  %vm1016_vm4 = vcmask 261120  }
  0x46   : > { %vm546_vm0 = vcmp.lt.s32.totalorder %v514_v57, 512 }
  0x47   : > { %vm547_vm2 = vcmp.lt.s32.totalorder %v515_v61, 512  ;;  %v578_v14 = vsel %vm546_vm0, %v447_v59, 0.0 }
  0x48   : > { %v579_v2 = vsel %vm547_vm2, %v448_v60, 0.0 }
  0x49   : > { %v595_v62 = vpack.c.bf16 %v579_v2, %v578_v14 }
  0x4b   : > { %1455 = vmatmul.mubr.msk.bf16.gmra.mrb[24].mxu0 %vm604_vm1, %v593_v56  ;;  %1489 = vmatmul.mubr.msk.bf16.gmra.mrb[24].mxu1 %vm604_vm1, %v593_v56 }
  0x4c   : > { %1458 = vmatprep.mubr.msk.bf16.mxu0 %vm604_vm1, %v594_v58  ;;  %1492 = vmatprep.mubr.msk.bf16.mxu1 %vm604_vm1, %v594_v58 }
  0x53   : > { %1459 = vmatmul.mubr.msk.bf16.gmra.mrb[28].mxu0 %vm604_vm1, %v595_v62  ;;  %1493 = vmatmul.mubr.msk.bf16.gmra.mrb[28].mxu1 %vm604_vm1, %v595_v62  ;;  %vm1118_vm1 = vcmask 57344  }
  0xee   : > { %v1432_v3 = vpop.f32.mrb[0].mxu0  ;;  %v1466_v63 = vpop.f32.mrb[0].mxu1 }
  0xef   : > { %817 = vst.msk [vmem:[%s1800_s19 + $0x10] sm:$0xff] %vm814_vm3, %v1432_v3  ;;  %v687_v0 = vpop.f32.mrb[1].mxu0  ;;  %v889_v1 = vpop.f32.mrb[1].mxu1  ;;  %v1122_v10 = vmul.f32 %v1432_v3, %v1432_v3  ;;  %v1052_v16 = vsel %vm814_vm3, %v1432_v3, 0.0 }
  0xf0   : > { %1019 = vst.msk [vmem:[%s1806_s22 + $0x10] sm:$0xff] %vm1016_vm4, %v1466_v63  ;;  %v1120_v4 = vmul.f32 %v687_v0, %v687_v0  ;;  %v1433_v6 = vpop.f32.mrb[2].mxu0  ;;  %1017 = vst.msk [vmem:[%s1806_s22] sm:$0xff] %vm1016_vm4, %v889_v1  ;;  %v1467_v7 = vpop.f32.mrb[2].mxu1  ;;  %v1049_v11 = vsel %vm814_vm3, %v687_v0, 0.0 }
  0xf1   : > { %815 = vst.msk [vmem:[%s1800_s19] sm:$0xff] %vm814_vm3, %v687_v0  ;;  %818 = vst.msk [vmem:[%s1800_s19 + $0x18] sm:$0xff] %vm814_vm3, %v1433_v6  ;;  %v690_v8 = vpop.f32.mrb[3].mxu0  ;;  %v892_v9 = vpop.f32.mrb[3].mxu1  ;;  %v1123_v18 = vmul.f32 %v1433_v6, %v1433_v6  ;;  %v1155_v22 = vsel %vm814_vm3, %v1122_v10, 0.0  ;;  %v1054_v23 = vsel %vm814_vm3, %v1433_v6, 0.0 }
  0xf2   : > { %1020 = vst.msk [vmem:[%s1806_s22 + $0x18] sm:$0xff] %vm1016_vm4, %v1467_v7  ;;  %v1050_v12 = vsel %vm814_vm3, %v690_v8, 0.0  ;;  %v1121_v13 = vmul.f32 %v690_v8, %v690_v8  ;;  %1018 = vst.msk [vmem:[%s1806_s22 + $0x8] sm:$0xff] %vm1016_vm4, %v892_v9  ;;  %v1152_v17 = vsel %vm814_vm3, %v1120_v4, 0.0 }
  0xf3   : > { %816 = vst.msk [vmem:[%s1800_s19 + $0x8] sm:$0xff] %vm814_vm3, %v690_v8  ;;  %v1051_v15 = vadd.f32 %v1050_v12, %v1049_v11  ;;  %v1157_v30 = vsel %vm814_vm3, %v1123_v18, 0.0 }
  0xf4   : > { %v1153_v19 = vsel %vm814_vm3, %v1121_v13, 0.0 }
  0xf5   : > { %v1053_v20 = vadd.f32 %v1052_v16, %v1051_v15  ;;  %v1154_v21 = vadd.f32 %v1153_v19, %v1152_v17 }
  0xf6   : > { %v1436_v24 = vpop.f32.mrb[4].mxu0  ;;  %v1470_v25 = vpop.f32.mrb[4].mxu1 }
  0xf7   : > { %v1156_v26 = vadd.f32 %v1155_v22, %v1154_v21  ;;  %821 = vst.msk [vmem:[%s1800_s19 + $0x30] sm:$0xff] %vm814_vm3, %v1436_v24  ;;  %v703_v27 = vpop.f32.mrb[5].mxu0  ;;  %v1055_v28 = vadd.f32 %v1054_v23, %v1053_v20  ;;  %v905_v29 = vpop.f32.mrb[5].mxu1  ;;  %v1126_v39 = vmul.f32 %v1436_v24, %v1436_v24  ;;  %v1060_v45 = vsel %vm814_vm3, %v1436_v24, 0.0 }
  0xf8   : > { %1023 = vst.msk [vmem:[%s1806_s22 + $0x30] sm:$0xff] %vm1016_vm4, %v1470_v25  ;;  %v1056_v31 = vsel %vm814_vm3, %v703_v27, 0.0  ;;  %v1124_v32 = vmul.f32 %v703_v27, %v703_v27  ;;  %v1437_v33 = vpop.f32.mrb[6].mxu0  ;;  %1021 = vst.msk [vmem:[%s1806_s22 + $0x20] sm:$0xff] %vm1016_vm4, %v905_v29  ;;  %v1471_v34 = vpop.f32.mrb[6].mxu1 }
  0xf9   : > { %819 = vst.msk [vmem:[%s1800_s19 + $0x20] sm:$0xff] %vm814_vm3, %v703_v27  ;;  %v1057_v35 = vadd.f32 %v1056_v31, %v1055_v28  ;;  %v1158_v36 = vadd.f32 %v1157_v30, %v1156_v26  ;;  %822 = vst.msk [vmem:[%s1800_s19 + $0x38] sm:$0xff] %vm814_vm3, %v1437_v33  ;;  %v706_v37 = vpop.f32.mrb[7].mxu0  ;;  %v908_v38 = vpop.f32.mrb[7].mxu1  ;;  %v1127_v46 = vmul.f32 %v1437_v33, %v1437_v33  ;;  %v1163_v50 = vsel %vm814_vm3, %v1126_v39, 0.0 }
  0xfa   : > { %1024 = vst.msk [vmem:[%s1806_s22 + $0x38] sm:$0xff] %vm1016_vm4, %v1471_v34  ;;  %v1159_v40 = vsel %vm814_vm3, %v1124_v32, 0.0  ;;  %v1058_v41 = vsel %vm814_vm3, %v706_v37, 0.0  ;;  %v1125_v42 = vmul.f32 %v706_v37, %v706_v37  ;;  %1022 = vst.msk [vmem:[%s1806_s22 + $0x28] sm:$0xff] %vm1016_vm4, %v908_v38  ;;  %v1062_v5 = vsel %vm814_vm3, %v1437_v33, 0.0 }
  0xfb   : > { %820 = vst.msk [vmem:[%s1800_s19 + $0x28] sm:$0xff] %vm814_vm3, %v706_v37  ;;  %v1160_v43 = vadd.f32 %v1159_v40, %v1158_v36  ;;  %v1059_v44 = vadd.f32 %v1058_v41, %v1057_v35  ;;  %v1165_v57 = vsel %vm814_vm3, %v1127_v46, 0.0 }
  0xfc   : > { %v1161_v47 = vsel %vm814_vm3, %v1125_v42, 0.0 }
  0xfd   : > { %v1061_v48 = vadd.f32 %v1060_v45, %v1059_v44  ;;  %v1162_v49 = vadd.f32 %v1161_v47, %v1160_v43 }
  0xfe   : > { %v1440_v51 = vpop.f32.mrb[8].mxu0  ;;  %v1474_v52 = vpop.f32.mrb[8].mxu1 }
  0xff   : > { %v1164_v53 = vadd.f32 %v1163_v50, %v1162_v49  ;;  %825 = vst.msk [vmem:[%s1800_s19 + $0x50] sm:$0xff] %vm814_vm3, %v1440_v51  ;;  %v719_v54 = vpop.f32.mrb[9].mxu0  ;;  %v1063_v55 = vadd.f32 %v1062_v5, %v1061_v48  ;;  %v921_v56 = vpop.f32.mrb[9].mxu1  ;;  %v1130_v63 = vmul.f32 %v1440_v51, %v1440_v51  ;;  %v1068_v8 = vsel %vm814_vm3, %v1440_v51, 0.0 }
 0x100   : > { %1027 = vst.msk [vmem:[%s1806_s22 + $0x50] sm:$0xff] %vm1016_vm4, %v1474_v52  ;;  %v1064_v58 = vsel %vm814_vm3, %v719_v54, 0.0  ;;  %v1128_v59 = vmul.f32 %v719_v54, %v719_v54  ;;  %v1441_v60 = vpop.f32.mrb[10].mxu0  ;;  %1025 = vst.msk [vmem:[%s1806_s22 + $0x40] sm:$0xff] %vm1016_vm4, %v921_v56  ;;  %v1475_v61 = vpop.f32.mrb[10].mxu1 }
 0x101   : > { %823 = vst.msk [vmem:[%s1800_s19 + $0x40] sm:$0xff] %vm814_vm3, %v719_v54  ;;  %v1065_v14 = vadd.f32 %v1064_v58, %v1063_v55  ;;  %v1166_v2 = vadd.f32 %v1165_v57, %v1164_v53  ;;  %826 = vst.msk [vmem:[%s1800_s19 + $0x58] sm:$0xff] %vm814_vm3, %v1441_v60  ;;  %v722_v62 = vpop.f32.mrb[11].mxu0  ;;  %v924_v3 = vpop.f32.mrb[11].mxu1  ;;  %v1131_v9 = vmul.f32 %v1441_v60, %v1441_v60  ;;  %v1171_v13 = vsel %vm814_vm3, %v1130_v63, 0.0 }
 0x102   : > { %1028 = vst.msk [vmem:[%s1806_s22 + $0x58] sm:$0xff] %vm1016_vm4, %v1475_v61  ;;  %v1167_v0 = vsel %vm814_vm3, %v1128_v59, 0.0  ;;  %v1066_v1 = vsel %vm814_vm3, %v722_v62, 0.0  ;;  %v1129_v4 = vmul.f32 %v722_v62, %v722_v62  ;;  %1026 = vst.msk [vmem:[%s1806_s22 + $0x48] sm:$0xff] %vm1016_vm4, %v924_v3  ;;  %v1070_v15 = vsel %vm814_vm3, %v1441_v60, 0.0 }
 0x103   : > { %824 = vst.msk [vmem:[%s1800_s19 + $0x48] sm:$0xff] %vm814_vm3, %v722_v62  ;;  %v1168_v6 = vadd.f32 %v1167_v0, %v1166_v2  ;;  %v1067_v7 = vadd.f32 %v1066_v1, %v1065_v14  ;;  %v1173_v22 = vsel %vm814_vm3, %v1131_v9, 0.0 }
 0x104   : > { %v1169_v10 = vsel %vm814_vm3, %v1129_v4, 0.0 }
 0x105   : > { %v1069_v11 = vadd.f32 %v1068_v8, %v1067_v7  ;;  %v1170_v12 = vadd.f32 %v1169_v10, %v1168_v6 }
 0x106   : > { %v1444_v16 = vpop.f32.mrb[12].mxu0  ;;  %v1478_v17 = vpop.f32.mrb[12].mxu1 }
 0x107   : > { %v1172_v18 = vadd.f32 %v1171_v13, %v1170_v12  ;;  %829 = vst.msk [vmem:[%s1800_s19 + $0x70] sm:$0xff] %vm814_vm3, %v1444_v16  ;;  %v735_v19 = vpop.f32.mrb[13].mxu0  ;;  %v1071_v20 = vadd.f32 %v1070_v15, %v1069_v11  ;;  %v937_v21 = vpop.f32.mrb[13].mxu1  ;;  %v1134_v31 = vmul.f32 %v1444_v16, %v1444_v16  ;;  %v1076_v37 = vsel %vm814_vm3, %v1444_v16, 0.0 }
 0x108   : > { %1031 = vst.msk [vmem:[%s1806_s22 + $0x70] sm:$0xff] %vm1016_vm4, %v1478_v17  ;;  %v1072_v23 = vsel %vm814_vm3, %v735_v19, 0.0  ;;  %v1132_v24 = vmul.f32 %v735_v19, %v735_v19  ;;  %v1445_v25 = vpop.f32.mrb[14].mxu0  ;;  %1029 = vst.msk [vmem:[%s1806_s22 + $0x60] sm:$0xff] %vm1016_vm4, %v937_v21  ;;  %v1479_v26 = vpop.f32.mrb[14].mxu1 }
 0x109   : > { %827 = vst.msk [vmem:[%s1800_s19 + $0x60] sm:$0xff] %vm814_vm3, %v735_v19  ;;  %v1073_v27 = vadd.f32 %v1072_v23, %v1071_v20  ;;  %v1174_v28 = vadd.f32 %v1173_v22, %v1172_v18  ;;  %830 = vst.msk [vmem:[%s1800_s19 + $0x78] sm:$0xff] %vm814_vm3, %v1445_v25  ;;  %v738_v29 = vpop.f32.mrb[15].mxu0  ;;  %v940_v30 = vpop.f32.mrb[15].mxu1  ;;  %v1135_v38 = vmul.f32 %v1445_v25, %v1445_v25  ;;  %v1179_v42 = vsel %vm814_vm3, %v1134_v31, 0.0 }
 0x10a   : > { %1032 = vst.msk [vmem:[%s1806_s22 + $0x78] sm:$0xff] %vm1016_vm4, %v1479_v26  ;;  %v1175_v32 = vsel %vm814_vm3, %v1132_v24, 0.0  ;;  %v1074_v33 = vsel %vm814_vm3, %v738_v29, 0.0  ;;  %v1133_v34 = vmul.f32 %v738_v29, %v738_v29  ;;  %1030 = vst.msk [vmem:[%s1806_s22 + $0x68] sm:$0xff] %vm1016_vm4, %v940_v30  ;;  %v1078_v43 = vsel %vm814_vm3, %v1445_v25, 0.0 }
 0x10b   : > { %828 = vst.msk [vmem:[%s1800_s19 + $0x68] sm:$0xff] %vm814_vm3, %v738_v29  ;;  %v1176_v35 = vadd.f32 %v1175_v32, %v1174_v28  ;;  %v1075_v36 = vadd.f32 %v1074_v33, %v1073_v27  ;;  %v1181_v50 = vsel %vm814_vm3, %v1135_v38, 0.0 }
 0x10c   : > { %v1177_v39 = vsel %vm814_vm3, %v1133_v34, 0.0 }
 0x10d   : > { %v1077_v40 = vadd.f32 %v1076_v37, %v1075_v36  ;;  %v1178_v41 = vadd.f32 %v1177_v39, %v1176_v35 }
 0x10e   : > { %v1448_v44 = vpop.f32.mrb[16].mxu0  ;;  %v1482_v45 = vpop.f32.mrb[16].mxu1 }
 0x10f   : > { %v1180_v46 = vadd.f32 %v1179_v42, %v1178_v41  ;;  %833 = vst.msk [vmem:[%s1800_s19 + $0x90] sm:$0xff] %vm814_vm3, %v1448_v44  ;;  %v751_v47 = vpop.f32.mrb[17].mxu0  ;;  %v1079_v48 = vadd.f32 %v1078_v43, %v1077_v40  ;;  %v953_v49 = vpop.f32.mrb[17].mxu1  ;;  %v1138_v58 = vmul.f32 %v1448_v44, %v1448_v44  ;;  %v1084_v62 = vsel %vm814_vm3, %v1448_v44, 0.0 }
 0x110   : > { %1035 = vst.msk [vmem:[%s1806_s22 + $0x90] sm:$0xff] %vm1016_vm4, %v1482_v45  ;;  %v1080_v5 = vsel %vm814_vm3, %v751_v47, 0.0  ;;  %v1136_v51 = vmul.f32 %v751_v47, %v751_v47  ;;  %v1449_v52 = vpop.f32.mrb[18].mxu0  ;;  %1033 = vst.msk [vmem:[%s1806_s22 + $0x80] sm:$0xff] %vm1016_vm4, %v953_v49  ;;  %v1483_v53 = vpop.f32.mrb[18].mxu1 }
 0x111   : > { %831 = vst.msk [vmem:[%s1800_s19 + $0x80] sm:$0xff] %vm814_vm3, %v751_v47  ;;  %v1081_v54 = vadd.f32 %v1080_v5, %v1079_v48  ;;  %v1182_v55 = vadd.f32 %v1181_v50, %v1180_v46  ;;  %834 = vst.msk [vmem:[%s1800_s19 + $0x98] sm:$0xff] %vm814_vm3, %v1449_v52  ;;  %v754_v56 = vpop.f32.mrb[19].mxu0  ;;  %v956_v57 = vpop.f32.mrb[19].mxu1  ;;  %v1139_v3 = vmul.f32 %v1449_v52, %v1449_v52  ;;  %v1187_v4 = vsel %vm814_vm3, %v1138_v58, 0.0 }
 0x112   : > { %1036 = vst.msk [vmem:[%s1806_s22 + $0x98] sm:$0xff] %vm1016_vm4, %v1483_v53  ;;  %v1183_v59 = vsel %vm814_vm3, %v1136_v51, 0.0  ;;  %v1082_v60 = vsel %vm814_vm3, %v754_v56, 0.0  ;;  %v1137_v61 = vmul.f32 %v754_v56, %v754_v56  ;;  %1034 = vst.msk [vmem:[%s1806_s22 + $0x88] sm:$0xff] %vm1016_vm4, %v956_v57  ;;  %v1086_v6 = vsel %vm814_vm3, %v1449_v52, 0.0 }
 0x113   : > { %832 = vst.msk [vmem:[%s1800_s19 + $0x88] sm:$0xff] %vm814_vm3, %v754_v56  ;;  %v1184_v14 = vadd.f32 %v1183_v59, %v1182_v55  ;;  %v1083_v2 = vadd.f32 %v1082_v60, %v1081_v54  ;;  %v1189_v13 = vsel %vm814_vm3, %v1139_v3, 0.0 }
 0x114   : > { %v1185_v63 = vsel %vm814_vm3, %v1137_v61, 0.0 }
 0x115   : > { %v1085_v0 = vadd.f32 %v1084_v62, %v1083_v2  ;;  %v1186_v1 = vadd.f32 %v1185_v63, %v1184_v14 }
 0x116   : > { %v1452_v7 = vpop.f32.mrb[20].mxu0  ;;  %v1486_v8 = vpop.f32.mrb[20].mxu1 }
 0x117   : > { %v1188_v9 = vadd.f32 %v1187_v4, %v1186_v1  ;;  %837 = vst.msk [vmem:[%s1800_s19 + $0xb0] sm:$0xff] %vm814_vm3, %v1452_v7  ;;  %v767_v10 = vpop.f32.mrb[21].mxu0  ;;  %v1087_v11 = vadd.f32 %v1086_v6, %v1085_v0  ;;  %v969_v12 = vpop.f32.mrb[21].mxu1  ;;  %v1142_v23 = vmul.f32 %v1452_v7, %v1452_v7  ;;  %v1092_v29 = vsel %vm814_vm3, %v1452_v7, 0.0 }
 0x118   : > { %1039 = vst.msk [vmem:[%s1806_s22 + $0xb0] sm:$0xff] %vm1016_vm4, %v1486_v8  ;;  %v1088_v15 = vsel %vm814_vm3, %v767_v10, 0.0  ;;  %v1140_v16 = vmul.f32 %v767_v10, %v767_v10  ;;  %v1453_v17 = vpop.f32.mrb[22].mxu0  ;;  %1037 = vst.msk [vmem:[%s1806_s22 + $0xa0] sm:$0xff] %vm1016_vm4, %v969_v12  ;;  %v1487_v18 = vpop.f32.mrb[22].mxu1 }
 0x119   : > { %835 = vst.msk [vmem:[%s1800_s19 + $0xa0] sm:$0xff] %vm814_vm3, %v767_v10  ;;  %v1089_v19 = vadd.f32 %v1088_v15, %v1087_v11  ;;  %v1190_v20 = vadd.f32 %v1189_v13, %v1188_v9  ;;  %838 = vst.msk [vmem:[%s1800_s19 + $0xb8] sm:$0xff] %vm814_vm3, %v1453_v17  ;;  %v770_v21 = vpop.f32.mrb[23].mxu0  ;;  %v972_v22 = vpop.f32.mrb[23].mxu1  ;;  %v1143_v30 = vmul.f32 %v1453_v17, %v1453_v17  ;;  %v1195_v34 = vsel %vm814_vm3, %v1142_v23, 0.0 }
 0x11a   : > { %1040 = vst.msk [vmem:[%s1806_s22 + $0xb8] sm:$0xff] %vm1016_vm4, %v1487_v18  ;;  %v1191_v24 = vsel %vm814_vm3, %v1140_v16, 0.0  ;;  %v1090_v25 = vsel %vm814_vm3, %v770_v21, 0.0  ;;  %v1141_v26 = vmul.f32 %v770_v21, %v770_v21  ;;  %1038 = vst.msk [vmem:[%s1806_s22 + $0xa8] sm:$0xff] %vm1016_vm4, %v972_v22  ;;  %v1094_v35 = vsel %vm814_vm3, %v1453_v17, 0.0 }
 0x11b   : > { %836 = vst.msk [vmem:[%s1800_s19 + $0xa8] sm:$0xff] %vm814_vm3, %v770_v21  ;;  %v1192_v27 = vadd.f32 %v1191_v24, %v1190_v20  ;;  %v1091_v28 = vadd.f32 %v1090_v25, %v1089_v19  ;;  %v1197_v42 = vsel %vm814_vm3, %v1143_v30, 0.0 }
 0x11c   : > { %v1193_v31 = vsel %vm814_vm3, %v1141_v26, 0.0 }
 0x11d   : > { %v1093_v32 = vadd.f32 %v1092_v29, %v1091_v28  ;;  %v1194_v33 = vadd.f32 %v1193_v31, %v1192_v27 }
 0x11e   : > { %v1456_v36 = vpop.f32.mrb[24].mxu0  ;;  %v1490_v37 = vpop.f32.mrb[24].mxu1 }
 0x11f   : > { %v1196_v38 = vadd.f32 %v1195_v34, %v1194_v33  ;;  %841 = vst.msk [vmem:[%s1800_s19 + $0xd0] sm:$0xff] %vm814_vm3, %v1456_v36  ;;  %v783_v39 = vpop.f32.mrb[25].mxu0  ;;  %v1095_v40 = vadd.f32 %v1094_v35, %v1093_v32  ;;  %v985_v41 = vpop.f32.mrb[25].mxu1  ;;  %v1146_v5 = vmul.f32 %v1456_v36, %v1456_v36  ;;  %v1100_v56 = vsel %vm814_vm3, %v1456_v36, 0.0 }
 0x120   : > { %1043 = vst.msk [vmem:[%s1806_s22 + $0xd0] sm:$0xff] %vm1016_vm4, %v1490_v37  ;;  %v1096_v43 = vsel %vm814_vm3, %v783_v39, 0.0  ;;  %v1144_v44 = vmul.f32 %v783_v39, %v783_v39  ;;  %v1457_v45 = vpop.f32.mrb[26].mxu0  ;;  %1041 = vst.msk [vmem:[%s1806_s22 + $0xc0] sm:$0xff] %vm1016_vm4, %v985_v41  ;;  %v1491_v46 = vpop.f32.mrb[26].mxu1 }
 0x121   : > { %839 = vst.msk [vmem:[%s1800_s19 + $0xc0] sm:$0xff] %vm814_vm3, %v783_v39  ;;  %v1097_v47 = vadd.f32 %v1096_v43, %v1095_v40  ;;  %v1198_v48 = vadd.f32 %v1197_v42, %v1196_v38  ;;  %842 = vst.msk [vmem:[%s1800_s19 + $0xd8] sm:$0xff] %vm814_vm3, %v1457_v45  ;;  %v786_v49 = vpop.f32.mrb[27].mxu0  ;;  %v988_v50 = vpop.f32.mrb[27].mxu1  ;;  %v1147_v57 = vmul.f32 %v1457_v45, %v1457_v45  ;;  %v1203_v61 = vsel %vm814_vm3, %v1146_v5, 0.0 }
 0x122   : > { %1044 = vst.msk [vmem:[%s1806_s22 + $0xd8] sm:$0xff] %vm1016_vm4, %v1491_v46  ;;  %v1199_v51 = vsel %vm814_vm3, %v1144_v44, 0.0  ;;  %v1098_v52 = vsel %vm814_vm3, %v786_v49, 0.0  ;;  %v1145_v53 = vmul.f32 %v786_v49, %v786_v49  ;;  %1042 = vst.msk [vmem:[%s1806_s22 + $0xc8] sm:$0xff] %vm1016_vm4, %v988_v50  ;;  %v1102_v14 = vsel %vm814_vm3, %v1457_v45, 0.0 }
 0x123   : > { %840 = vst.msk [vmem:[%s1800_s19 + $0xc8] sm:$0xff] %vm814_vm3, %v786_v49  ;;  %v1200_v54 = vadd.f32 %v1199_v51, %v1198_v48  ;;  %v1099_v55 = vadd.f32 %v1098_v52, %v1097_v47  ;;  %v1205_v4 = vsel %vm814_vm3, %v1147_v57, 0.0 }
 0x124   : > { %v1201_v58 = vsel %vm814_vm3, %v1145_v53, 0.0 }
 0x125   : > { %v1101_v59 = vadd.f32 %v1100_v56, %v1099_v55  ;;  %v1202_v60 = vadd.f32 %v1201_v58, %v1200_v54 }
 0x126   : > { %v1460_v2 = vpop.f32.mrb[28].mxu0  ;;  %v1494_v62 = vpop.f32.mrb[28].mxu1 }
 0x127   : > { %v1204_v3 = vadd.f32 %v1203_v61, %v1202_v60  ;;  %845 = vst.msk [vmem:[%s1800_s19 + $0xf0] sm:$0xff] %vm814_vm3, %v1460_v2  ;;  %v799_v63 = vpop.f32.mrb[29].mxu0  ;;  %v1103_v0 = vadd.f32 %v1102_v14, %v1101_v59  ;;  %v1001_v1 = vpop.f32.mrb[29].mxu1  ;;  %v1150_v10 = vmul.f32 %v1460_v2, %v1460_v2  ;;  %v1108_v22 = vsel %vm814_vm3, %v1460_v2, 0.0 }
 0x128   : > { %1047 = vst.msk [vmem:[%s1806_s22 + $0xf0] sm:$0xff] %vm1016_vm4, %v1494_v62  ;;  %v1104_v6 = vsel %vm814_vm3, %v799_v63, 0.0  ;;  %v1148_v7 = vmul.f32 %v799_v63, %v799_v63  ;;  %v1461_v8 = vpop.f32.mrb[30].mxu0  ;;  %1045 = vst.msk [vmem:[%s1806_s22 + $0xe0] sm:$0xff] %vm1016_vm4, %v1001_v1  ;;  %v1495_v9 = vpop.f32.mrb[30].mxu1 }
 0x129   : > { %843 = vst.msk [vmem:[%s1800_s19 + $0xe0] sm:$0xff] %vm814_vm3, %v799_v63  ;;  %v1105_v11 = vadd.f32 %v1104_v6, %v1103_v0  ;;  %v1206_v12 = vadd.f32 %v1205_v4, %v1204_v3  ;;  %846 = vst.msk [vmem:[%s1800_s19 + $0xf8] sm:$0xff] %vm814_vm3, %v1461_v8  ;;  %v802_v13 = vpop.f32.mrb[31].mxu0  ;;  %v1004_v15 = vpop.f32.mrb[31].mxu1  ;;  %v1151_v17 = vmul.f32 %v1461_v8, %v1461_v8  ;;  %v1211_v27 = vsel %vm814_vm3, %v1150_v10, 0.0 }
 0x12a   : > { %1048 = vst.msk [vmem:[%s1806_s22 + $0xf8] sm:$0xff] %vm1016_vm4, %v1495_v9  ;;  %v1207_v16 = vsel %vm814_vm3, %v1148_v7, 0.0  ;;  %v1106_v18 = vsel %vm814_vm3, %v802_v13, 0.0  ;;  %v1149_v19 = vmul.f32 %v802_v13, %v802_v13  ;;  %1046 = vst.msk [vmem:[%s1806_s22 + $0xe8] sm:$0xff] %vm1016_vm4, %v1004_v15  ;;  %v1110_v28 = vsel %vm814_vm3, %v1461_v8, 0.0 }
 0x12b   : > { %844 = vst.msk [vmem:[%s1800_s19 + $0xe8] sm:$0xff] %vm814_vm3, %v802_v13  ;;  %v1208_v20 = vadd.f32 %v1207_v16, %v1206_v12  ;;  %v1107_v21 = vadd.f32 %v1106_v18, %v1105_v11  ;;  %v1213_v23 = vsel %vm814_vm3, %v1151_v17, 0.0 }
 0x12c   : > { %v1209_v24 = vsel %vm814_vm3, %v1149_v19, 0.0 }
 0x12d   : > { %v1109_v25 = vadd.f32 %v1108_v22, %v1107_v21  ;;  %v1210_v26 = vadd.f32 %v1209_v24, %v1208_v20 }
 0x12f   : > { %v1111_v29 = vadd.f32 %v1110_v28, %v1109_v25  ;;  %v1212_v30 = vadd.f32 %v1211_v27, %v1210_v26 }
 0x131   : > { %v1112_v31 = vrot.slane %v1111_v29, 4  ;;  %v1214_v32 = vadd.f32 %v1213_v23, %v1212_v30 }
 0x133   : > { %v1113_v33 = vadd.f32 %v1112_v31, %v1111_v29  ;;  %v1215_v34 = vrot.slane %v1214_v32, 4 }
 0x135   : > { %v1114_v35 = vrot.slane %v1113_v33, 2  ;;  %v1216_v36 = vadd.f32 %v1215_v34, %v1214_v32 }
 0x137   : > { %v1115_v37 = vadd.f32 %v1114_v35, %v1113_v33  ;;  %v1217_v38 = vrot.slane %v1216_v36, 2 }
 0x139   : > { %v1116_v39 = vrot.slane %v1115_v37, 1  ;;  %v1218_v40 = vadd.f32 %v1217_v38, %v1216_v36 }
 0x13b   : > { %v1117_v41 = vadd.f32 %v1116_v39, %v1115_v37  ;;  %v1219_v42 = vrot.slane %v1218_v40, 1 }
 0x13d   : > { %1119 = vst.msk [vmem:[%s305_s28] sm:$0x1] %vm1118_vm1, %v1117_v41  ;;  %v1220_v43 = vadd.f32 %v1219_v42, %v1218_v40 }
 0x13f   : > { %1221 = vst.msk [vmem:[%s305_s28 + $0x1] sm:$0x1] %vm1118_vm1, %v1220_v43 }
 0x140 PF: > { %s18_s24 = sadd.s32 1, %s1512_s24  }
 0x141   : > { %p15_p5 = scmp.ge.s32.totalorder %s18_s24, 4  }
 0x143   :  { %17 = sbr.rel (!%p15_p5) target bundleno = 1 (0x1), region = 94 }

</bundles_post_ra>
